<compile_context>
chip_gen: v7x
topology: tpu7x:2x2x1
jax: 0.10.0
libtpu: 0.0.40
codegen_flags: <defaults>
</compile_context>

<pallas_src>
import functools

import jax
import jax.numpy as jnp
from jax import lax
from jax.experimental import pallas as pl
from jax.experimental.pallas import tpu as pltpu


def _multiconv_kernel(w_ref, b_ref, x_ref, o_ref, xflat, patches,
                      *, H, W, C_in, C_out, K):
    """Folded KxK 'same' conv for one batch element via im2col + one MXU matmul.

    w_ref   : VMEM (C_out, K*K*C_in)   folded weights, column index = (kh*K + kw)*C_in + ci
    b_ref   : VMEM (C_out, 1)          folded bias (b3 + b7)
    x_ref   : VMEM (1, C_in, H*W)      flattened image (lane-dense)
    o_ref   : VMEM (1, C_out, H*W)     flattened output (lane-dense)
    xflat   : VMEM (C_in, H*W + 2*(P*W + P))  zero-padded flat image (in-kernel halo)
    patches : VMEM (K*K*C_in, H*W)     im2col patch matrix
    """
    P = K // 2
    HW = H * W
    BASE = P * W + P                       # image data offset inside the flat scratch

    # --- In-kernel halo: zero-fill once, then one contiguous lane-offset store. ---
    xflat[...] = jnp.zeros_like(xflat)
    xflat[:, BASE:BASE + HW] = x_ref[0].astype(jnp.float32)

    # --- Column-wrap masks (depend only on kw); hoisted out of the tap loop. ---
    col = lax.broadcasted_iota(jnp.int32, (1, HW), 1) % W          # output column index
    col_masks = []
    for kw in range(K):
        dw = kw - P
        if dw == 0:
            col_masks.append(None)
        else:
            col_masks.append(jnp.logical_and(col + dw >= 0, col + dw < W))

    # --- Build the im2col patch matrix: 49 static lane-offset loads + masked stores. ---
    # Flat-shift identity: x_pad[h + kh - P, w + kw - P] == xflat[BASE + dh*W + dw + (h*W+w)]
    # whenever 0 <= w + dw < W; the wrapped lanes are zeroed by col_masks[kw].
    for kh in range(K):
        dh = kh - P
        for kw in range(K):
            dw = kw - P
            start = BASE + dh * W + dw
            sl = xflat[:, start:start + HW]                        # (C_in, HW)
            if col_masks[kw] is not None:
                sl = jnp.where(col_masks[kw], sl, 0.0)
            t = kh * K + kw
            patches[t * C_in:(t + 1) * C_in, :] = sl

    # --- One matmul on the MXU: (C_out, 196) x (196, 256) -> (C_out, 256), f32 accum. ---
    out = jnp.dot(w_ref[...], patches[...], preferred_element_type=jnp.float32)
    o_ref[0] = (out + b_ref[...]).astype(o_ref.dtype)


def multiconv_pallas(x_nchw, w3_oihw, b3, w7_oihw, b7):
    """sum(conv3(x), conv7(x)) with 'same' padding == one folded 7x7 'same' conv."""
    N, C_in, H, W = x_nchw.shape
    C_out = w7_oihw.shape[0]
    K = 7
    P = K // 2
    HW = H * W
    KKC = K * K * C_in
    FLAT = HW + 2 * (P * W + P)            # flat scratch length (covers all tap shifts)

    # --- Fold the two convolutions into one (wrapper-side, negligible cost). ---
    w_folded = w7_oihw.astype(jnp.float32) + jnp.pad(
        w3_oihw.astype(jnp.float32), ((0, 0), (0, 0), (2, 2), (2, 2)))
    # OIHW -> (C_out, K*K*C_in) with column index (kh*K + kw)*C_in + ci (matches patches).
    w_mat = jnp.transpose(w_folded, (0, 2, 3, 1)).reshape(C_out, KKC)
    b_col = (b3 + b7).astype(jnp.float32).reshape(C_out, 1)

    # Metadata-only reshape: flatten spatial dims so the innermost dim is lane-dense.
    x_flat = x_nchw.reshape(N, C_in, HW)

    kernel = functools.partial(
        _multiconv_kernel, H=H, W=W, C_in=C_in, C_out=C_out, K=K)

    out_flat = pl.pallas_call(
        kernel,
        out_shape=jax.ShapeDtypeStruct((N, C_out, HW), x_nchw.dtype),
        grid_spec=pltpu.PrefetchScalarGridSpec(
            num_scalar_prefetch=0,
            grid=(N,),
            in_specs=[
                pl.BlockSpec((C_out, KKC), lambda n: (0, 0)),      # folded weights (VMEM)
                pl.BlockSpec((C_out, 1), lambda n: (0, 0)),        # folded bias (VMEM)
                pl.BlockSpec((1, C_in, HW), lambda n: (n, 0, 0)),  # one image per step
            ],
            out_specs=pl.BlockSpec((1, C_out, HW), lambda n: (n, 0, 0)),
            scratch_shapes=[
                pltpu.VMEM((C_in, FLAT), jnp.float32),             # padded flat image
                pltpu.VMEM((KKC, HW), jnp.float32),                # im2col patch matrix
            ],
        ),
        compiler_params=pltpu.CompilerParams(
            dimension_semantics=("parallel",)),
    )(w_mat, b_col, x_flat)

    return out_flat.reshape(N, C_out, H, W)


def _conv_ref(x_nchw, w_oihw, b, pad):
    out = lax.conv_general_dilated(
        x_nchw, w_oihw, window_strides=(1, 1),
        padding=((pad, pad), (pad, pad)),
        dimension_numbers=("NCHW", "OIHW", "NCHW"))
    return out + b.reshape(1, -1, 1, 1)


if __name__ == "__main__":
    key = jax.random.PRNGKey(0)
    N, C_in, H, W = 2, 4, 16, 16
    C_out = 4  # out_ch defaults to in_ch in the module

    kx, kw3, kb3, kw7, kb7 = jax.random.split(key, 5)
    x = jax.random.normal(kx, (N, C_in, H, W), jnp.float32)

    # Deterministic PyTorch-style uniform(-1/sqrt(fan_in), 1/sqrt(fan_in)) init.
    bound3 = 1.0 / (C_in * 3 * 3) ** 0.5
    bound7 = 1.0 / (C_in * 7 * 7) ** 0.5
    w3 = jax.random.uniform(kw3, (C_out, C_in, 3, 3), jnp.float32, -bound3, bound3)
    b3 = jax.random.uniform(kb3, (C_out,), jnp.float32, -bound3, bound3)
    w7 = jax.random.uniform(kw7, (C_out, C_in, 7, 7), jnp.float32, -bound7, bound7)
    b7 = jax.random.uniform(kb7, (C_out,), jnp.float32, -bound7, bound7)

    out = jax.block_until_ready(multiconv_pallas(x, w3, b3, w7, b7))

    # Pure-JAX reference (sum of the two 'same'-padded convolutions).
    ref = _conv_ref(x, w3, b3, 1) + _conv_ref(x, w7, b7, 3)
    assert out.shape == (N, C_out, H, W)
    assert jnp.allclose(out, ref, atol=2e-3, rtol=2e-3), \
        float(jnp.max(jnp.abs(out - ref)))

    print("KERNEL_OK")
</pallas_src>

<mosaic_0001>
module attributes {stable_mosaic.version = 11 : i64} {
  func.func @_multiconv_kernel(%arg0: i32, %arg1: memref<4x196xf32, #tpu.memory_space<vmem>>, %arg2: memref<4x1xf32, #tpu.memory_space<vmem>>, %arg3: memref<1x4x256xf32, #tpu.memory_space<vmem>>, %arg4: memref<1x4x256xf32, #tpu.memory_space<vmem>>, %arg5: memref<4x358xf32, #tpu.memory_space<vmem>>, %arg6: memref<196x256xf32, #tpu.memory_space<vmem>>) attributes {dimension_semantics = [#tpu.dimension_semantics<parallel>], iteration_bounds = array<i64: 2>, scalar_prefetch = 0 : i64, scratch_operands = 2 : i64, tpu.core_type = #tpu.core_type<tc>, window_params = [{pipeline_mode = #tpu.pipeline_mode<synchronous>, transform_indices = @transform_0, window_bounds = array<i64: 4, 196>}, {pipeline_mode = #tpu.pipeline_mode<synchronous>, transform_indices = @transform_1, window_bounds = array<i64: 4, 1>}, {transform_indices = @transform_2, window_bounds = array<i64: 1, 4, 256>}, {transform_indices = @transform_3, window_bounds = array<i64: 1, 4, 256>}]} {
    %cst = arith.constant 0.000000e+00 : f32
    %0 = vector.broadcast %cst : f32 to vector<4x358xf32>
    %c0 = arith.constant 0 : index
    %c0_0 = arith.constant 0 : index
    %1 = vector.load %arg5[%c0, %c0_0] : memref<4x358xf32, #tpu.memory_space<vmem>>, vector<4x358xf32>
    tpu.vector_store %arg5[%c0, %c0_0], %0 {strides = array<i32>} : memref<4x358xf32, #tpu.memory_space<vmem>>, vector<4x358xf32>,
    %c0_1 = arith.constant 0 : index
    %c0_2 = arith.constant 0 : index
    %c0_3 = arith.constant 0 : index
    %2 = vector.load %arg3[%c0_1, %c0_2, %c0_3] : memref<1x4x256xf32, #tpu.memory_space<vmem>>, vector<1x4x256xf32>
    %3 = vector.shape_cast %2 : vector<1x4x256xf32> to vector<4x256xf32>
    %c0_4 = arith.constant 0 : index
    %c51 = arith.constant 51 : index
    %4 = vector.load %arg5[%c0_4, %c51] : memref<4x358xf32, #tpu.memory_space<vmem>>, vector<4x256xf32>
    tpu.vector_store %arg5[%c0_4, %c51], %3 {strides = array<i32>} : memref<4x358xf32, #tpu.memory_space<vmem>>, vector<4x256xf32>,
    %5 = tpu.iota {dimensions = array<i32: 1>} : vector<1x256xi32>
    %c16_i32 = arith.constant 16 : i32
    %c0_i32 = arith.constant 0 : i32
    %6 = arith.cmpi eq, %c16_i32, %c0_i32 : i32
    %c1_i32 = arith.constant 1 : i32
    %7 = arith.select %6, %c1_i32, %c16_i32 : i32
    %8 = vector.broadcast %7 : i32 to vector<1x256xi32>
    %9 = arith.remsi %5, %8 : vector<1x256xi32>
    %c0_i32_5 = arith.constant 0 : i32
    %10 = vector.broadcast %c0_i32_5 : i32 to vector<1x256xi32>
    %11 = arith.cmpi ne, %9, %10 : vector<1x256xi32>
    %c0_i32_6 = arith.constant 0 : i32
    %12 = vector.broadcast %c0_i32_6 : i32 to vector<1x256xi32>
    %13 = arith.cmpi slt, %9, %12 : vector<1x256xi32>
    %c0_i32_7 = arith.constant 0 : i32
    %14 = arith.cmpi slt, %7, %c0_i32_7 : i32
    %15 = vector.broadcast %14 : i1 to vector<1x256xi1>
    %16 = vector.broadcast %15 : vector<1x256xi1> to vector<1x256xi1>
    %17 = arith.xori %13, %16 : vector<1x256xi1>
    %18 = arith.andi %17, %11 : vector<1x256xi1>
    %19 = vector.broadcast %7 : i32 to vector<1x256xi32>
    %20 = arith.addi %9, %19 : vector<1x256xi32>
    %21 = arith.select %18, %20, %9 : vector<1x256xi1>, vector<1x256xi32>
    %c-3_i32 = arith.constant -3 : i32
    %22 = vector.broadcast %c-3_i32 : i32 to vector<1x256xi32>
    %23 = arith.addi %21, %22 : vector<1x256xi32>
    %c0_i32_8 = arith.constant 0 : i32
    %24 = vector.broadcast %c0_i32_8 : i32 to vector<1x256xi32>
    %25 = arith.cmpi sge, %23, %24 : vector<1x256xi32>
    %c-3_i32_9 = arith.constant -3 : i32
    %26 = vector.broadcast %c-3_i32_9 : i32 to vector<1x256xi32>
    %27 = arith.addi %21, %26 : vector<1x256xi32>
    %c16_i32_10 = arith.constant 16 : i32
    %28 = vector.broadcast %c16_i32_10 : i32 to vector<1x256xi32>
    %29 = arith.cmpi slt, %27, %28 : vector<1x256xi32>
    %30 = arith.andi %25, %29 : vector<1x256xi1>
    %c-2_i32 = arith.constant -2 : i32
    %31 = vector.broadcast %c-2_i32 : i32 to vector<1x256xi32>
    %32 = arith.addi %21, %31 : vector<1x256xi32>
    %c0_i32_11 = arith.constant 0 : i32
    %33 = vector.broadcast %c0_i32_11 : i32 to vector<1x256xi32>
    %34 = arith.cmpi sge, %32, %33 : vector<1x256xi32>
    %c-2_i32_12 = arith.constant -2 : i32
    %35 = vector.broadcast %c-2_i32_12 : i32 to vector<1x256xi32>
    %36 = arith.addi %21, %35 : vector<1x256xi32>
    %c16_i32_13 = arith.constant 16 : i32
    %37 = vector.broadcast %c16_i32_13 : i32 to vector<1x256xi32>
    %38 = arith.cmpi slt, %36, %37 : vector<1x256xi32>
    %39 = arith.andi %34, %38 : vector<1x256xi1>
    %c-1_i32 = arith.constant -1 : i32
    %40 = vector.broadcast %c-1_i32 : i32 to vector<1x256xi32>
    %41 = arith.addi %21, %40 : vector<1x256xi32>
    %c0_i32_14 = arith.constant 0 : i32
    %42 = vector.broadcast %c0_i32_14 : i32 to vector<1x256xi32>
    %43 = arith.cmpi sge, %41, %42 : vector<1x256xi32>
    %c-1_i32_15 = arith.constant -1 : i32
    %44 = vector.broadcast %c-1_i32_15 : i32 to vector<1x256xi32>
    %45 = arith.addi %21, %44 : vector<1x256xi32>
    %c16_i32_16 = arith.constant 16 : i32
    %46 = vector.broadcast %c16_i32_16 : i32 to vector<1x256xi32>
    %47 = arith.cmpi slt, %45, %46 : vector<1x256xi32>
    %48 = arith.andi %43, %47 : vector<1x256xi1>
    %c1_i32_17 = arith.constant 1 : i32
    %49 = vector.broadcast %c1_i32_17 : i32 to vector<1x256xi32>
    %50 = arith.addi %21, %49 : vector<1x256xi32>
    %c0_i32_18 = arith.constant 0 : i32
    %51 = vector.broadcast %c0_i32_18 : i32 to vector<1x256xi32>
    %52 = arith.cmpi sge, %50, %51 : vector<1x256xi32>
    %c1_i32_19 = arith.constant 1 : i32
    %53 = vector.broadcast %c1_i32_19 : i32 to vector<1x256xi32>
    %54 = arith.addi %21, %53 : vector<1x256xi32>
    %c16_i32_20 = arith.constant 16 : i32
    %55 = vector.broadcast %c16_i32_20 : i32 to vector<1x256xi32>
    %56 = arith.cmpi slt, %54, %55 : vector<1x256xi32>
    %57 = arith.andi %52, %56 : vector<1x256xi1>
    %c2_i32 = arith.constant 2 : i32
    %58 = vector.broadcast %c2_i32 : i32 to vector<1x256xi32>
    %59 = arith.addi %21, %58 : vector<1x256xi32>
    %c0_i32_21 = arith.constant 0 : i32
    %60 = vector.broadcast %c0_i32_21 : i32 to vector<1x256xi32>
    %61 = arith.cmpi sge, %59, %60 : vector<1x256xi32>
    %c2_i32_22 = arith.constant 2 : i32
    %62 = vector.broadcast %c2_i32_22 : i32 to vector<1x256xi32>
    %63 = arith.addi %21, %62 : vector<1x256xi32>
    %c16_i32_23 = arith.constant 16 : i32
    %64 = vector.broadcast %c16_i32_23 : i32 to vector<1x256xi32>
    %65 = arith.cmpi slt, %63, %64 : vector<1x256xi32>
    %66 = arith.andi %61, %65 : vector<1x256xi1>
    %c3_i32 = arith.constant 3 : i32
    %67 = vector.broadcast %c3_i32 : i32 to vector<1x256xi32>
    %68 = arith.addi %21, %67 : vector<1x256xi32>
    %c0_i32_24 = arith.constant 0 : i32
    %69 = vector.broadcast %c0_i32_24 : i32 to vector<1x256xi32>
    %70 = arith.cmpi sge, %68, %69 : vector<1x256xi32>
    %c3_i32_25 = arith.constant 3 : i32
    %71 = vector.broadcast %c3_i32_25 : i32 to vector<1x256xi32>
    %72 = arith.addi %21, %71 : vector<1x256xi32>
    %c16_i32_26 = arith.constant 16 : i32
    %73 = vector.broadcast %c16_i32_26 : i32 to vector<1x256xi32>
    %74 = arith.cmpi slt, %72, %73 : vector<1x256xi32>
    %75 = arith.andi %70, %74 : vector<1x256xi1>
    %c0_27 = arith.constant 0 : index
    %c0_28 = arith.constant 0 : index
    %76 = vector.load %arg5[%c0_27, %c0_28] : memref<4x358xf32, #tpu.memory_space<vmem>>, vector<4x256xf32>
    %cst_29 = arith.constant 0.000000e+00 : f32
    %77 = vector.shape_cast %30 : vector<1x256xi1> to vector<1x256xi1>
    %78 = vector.broadcast %77 : vector<1x256xi1> to vector<4x256xi1>
    %79 = vector.broadcast %cst_29 : f32 to vector<4x256xf32>
    %80 = arith.select %78, %76, %79 : vector<4x256xi1>, vector<4x256xf32>
    %c0_30 = arith.constant 0 : index
    %c0_31 = arith.constant 0 : index
    %81 = vector.load %arg6[%c0_30, %c0_31] : memref<196x256xf32, #tpu.memory_space<vmem>>, vector<4x256xf32>
    tpu.vector_store %arg6[%c0_30, %c0_31], %80 {strides = array<i32>} : memref<196x256xf32, #tpu.memory_space<vmem>>, vector<4x256xf32>,
    %c0_32 = arith.constant 0 : index
    %c1 = arith.constant 1 : index
    %82 = vector.load %arg5[%c0_32, %c1] : memref<4x358xf32, #tpu.memory_space<vmem>>, vector<4x256xf32>
    %cst_33 = arith.constant 0.000000e+00 : f32
    %83 = vector.shape_cast %39 : vector<1x256xi1> to vector<1x256xi1>
    %84 = vector.broadcast %83 : vector<1x256xi1> to vector<4x256xi1>
    %85 = vector.broadcast %cst_33 : f32 to vector<4x256xf32>
    %86 = arith.select %84, %82, %85 : vector<4x256xi1>, vector<4x256xf32>
    %c4 = arith.constant 4 : index
    %c0_34 = arith.constant 0 : index
    %87 = vector.load %arg6[%c4, %c0_34] : memref<196x256xf32, #tpu.memory_space<vmem>>, vector<4x256xf32>
    tpu.vector_store %arg6[%c4, %c0_34], %86 {strides = array<i32>} : memref<196x256xf32, #tpu.memory_space<vmem>>, vector<4x256xf32>,
    %c0_35 = arith.constant 0 : index
    %c2 = arith.constant 2 : index
    %88 = vector.load %arg5[%c0_35, %c2] : memref<4x358xf32, #tpu.memory_space<vmem>>, vector<4x256xf32>
    %cst_36 = arith.constant 0.000000e+00 : f32
    %89 = vector.shape_cast %48 : vector<1x256xi1> to vector<1x256xi1>
    %90 = vector.broadcast %89 : vector<1x256xi1> to vector<4x256xi1>
    %91 = vector.broadcast %cst_36 : f32 to vector<4x256xf32>
    %92 = arith.select %90, %88, %91 : vector<4x256xi1>, vector<4x256xf32>
    %c8 = arith.constant 8 : index
    %c0_37 = arith.constant 0 : index
    %93 = vector.load %arg6[%c8, %c0_37] : memref<196x256xf32, #tpu.memory_space<vmem>>, vector<4x256xf32>
    tpu.vector_store %arg6[%c8, %c0_37], %92 {strides = array<i32>} : memref<196x256xf32, #tpu.memory_space<vmem>>, vector<4x256xf32>,
    %c0_38 = arith.constant 0 : index
    %c3 = arith.constant 3 : index
    %94 = vector.load %arg5[%c0_38, %c3] : memref<4x358xf32, #tpu.memory_space<vmem>>, vector<4x256xf32>
    %c12 = arith.constant 12 : index
    %c0_39 = arith.constant 0 : index
    %95 = vector.load %arg6[%c12, %c0_39] : memref<196x256xf32, #tpu.memory_space<vmem>>, vector<4x256xf32>
    tpu.vector_store %arg6[%c12, %c0_39], %94 {strides = array<i32>} : memref<196x256xf32, #tpu.memory_space<vmem>>, vector<4x256xf32>,
    %c0_40 = arith.constant 0 : index
    %c4_41 = arith.constant 4 : index
    %96 = vector.load %arg5[%c0_40, %c4_41] : memref<4x358xf32, #tpu.memory_space<vmem>>, vector<4x256xf32>
    %cst_42 = arith.constant 0.000000e+00 : f32
    %97 = vector.shape_cast %57 : vector<1x256xi1> to vector<1x256xi1>
    %98 = vector.broadcast %97 : vector<1x256xi1> to vector<4x256xi1>
    %99 = vector.broadcast %cst_42 : f32 to vector<4x256xf32>
    %100 = arith.select %98, %96, %99 : vector<4x256xi1>, vector<4x256xf32>
    %c16 = arith.constant 16 : index
    %c0_43 = arith.constant 0 : index
    %101 = vector.load %arg6[%c16, %c0_43] : memref<196x256xf32, #tpu.memory_space<vmem>>, vector<4x256xf32>
    tpu.vector_store %arg6[%c16, %c0_43], %100 {strides = array<i32>} : memref<196x256xf32, #tpu.memory_space<vmem>>, vector<4x256xf32>,
    %c0_44 = arith.constant 0 : index
    %c5 = arith.constant 5 : index
    %102 = vector.load %arg5[%c0_44, %c5] : memref<4x358xf32, #tpu.memory_space<vmem>>, vector<4x256xf32>
    %cst_45 = arith.constant 0.000000e+00 : f32
    %103 = vector.shape_cast %66 : vector<1x256xi1> to vector<1x256xi1>
    %104 = vector.broadcast %103 : vector<1x256xi1> to vector<4x256xi1>
    %105 = vector.broadcast %cst_45 : f32 to vector<4x256xf32>
    %106 = arith.select %104, %102, %105 : vector<4x256xi1>, vector<4x256xf32>
    %c20 = arith.constant 20 : index
    %c0_46 = arith.constant 0 : index
    %107 = vector.load %arg6[%c20, %c0_46] : memref<196x256xf32, #tpu.memory_space<vmem>>, vector<4x256xf32>
    tpu.vector_store %arg6[%c20, %c0_46], %106 {strides = array<i32>} : memref<196x256xf32, #tpu.memory_space<vmem>>, vector<4x256xf32>,
    %c0_47 = arith.constant 0 : index
    %c6 = arith.constant 6 : index
    %108 = vector.load %arg5[%c0_47, %c6] : memref<4x358xf32, #tpu.memory_space<vmem>>, vector<4x256xf32>
    %cst_48 = arith.constant 0.000000e+00 : f32
    %109 = vector.shape_cast %75 : vector<1x256xi1> to vector<1x256xi1>
    %110 = vector.broadcast %109 : vector<1x256xi1> to vector<4x256xi1>
    %111 = vector.broadcast %cst_48 : f32 to vector<4x256xf32>
    %112 = arith.select %110, %108, %111 : vector<4x256xi1>, vector<4x256xf32>
    %c24 = arith.constant 24 : index
    %c0_49 = arith.constant 0 : index
    %113 = vector.load %arg6[%c24, %c0_49] : memref<196x256xf32, #tpu.memory_space<vmem>>, vector<4x256xf32>
    tpu.vector_store %arg6[%c24, %c0_49], %112 {strides = array<i32>} : memref<196x256xf32, #tpu.memory_space<vmem>>, vector<4x256xf32>,
    %c0_50 = arith.constant 0 : index
    %c16_51 = arith.constant 16 : index
    %114 = vector.load %arg5[%c0_50, %c16_51] : memref<4x358xf32, #tpu.memory_space<vmem>>, vector<4x256xf32>
    %cst_52 = arith.constant 0.000000e+00 : f32
    %115 = vector.shape_cast %30 : vector<1x256xi1> to vector<1x256xi1>
    %116 = vector.broadcast %115 : vector<1x256xi1> to vector<4x256xi1>
    %117 = vector.broadcast %cst_52 : f32 to vector<4x256xf32>
    %118 = arith.select %116, %114, %117 : vector<4x256xi1>, vector<4x256xf32>
    %c28 = arith.constant 28 : index
    %c0_53 = arith.constant 0 : index
    %119 = vector.load %arg6[%c28, %c0_53] : memref<196x256xf32, #tpu.memory_space<vmem>>, vector<4x256xf32>
    tpu.vector_store %arg6[%c28, %c0_53], %118 {strides = array<i32>} : memref<196x256xf32, #tpu.memory_space<vmem>>, vector<4x256xf32>,
    %c0_54 = arith.constant 0 : index
    %c17 = arith.constant 17 : index
    %120 = vector.load %arg5[%c0_54, %c17] : memref<4x358xf32, #tpu.memory_space<vmem>>, vector<4x256xf32>
    %cst_55 = arith.constant 0.000000e+00 : f32
    %121 = vector.shape_cast %39 : vector<1x256xi1> to vector<1x256xi1>
    %122 = vector.broadcast %121 : vector<1x256xi1> to vector<4x256xi1>
    %123 = vector.broadcast %cst_55 : f32 to vector<4x256xf32>
    %124 = arith.select %122, %120, %123 : vector<4x256xi1>, vector<4x256xf32>
    %c32 = arith.constant 32 : index
    %c0_56 = arith.constant 0 : index
    %125 = vector.load %arg6[%c32, %c0_56] : memref<196x256xf32, #tpu.memory_space<vmem>>, vector<4x256xf32>
    tpu.vector_store %arg6[%c32, %c0_56], %124 {strides = array<i32>} : memref<196x256xf32, #tpu.memory_space<vmem>>, vector<4x256xf32>,
    %c0_57 = arith.constant 0 : index
    %c18 = arith.constant 18 : index
    %126 = vector.load %arg5[%c0_57, %c18] : memref<4x358xf32, #tpu.memory_space<vmem>>, vector<4x256xf32>
    %cst_58 = arith.constant 0.000000e+00 : f32
    %127 = vector.shape_cast %48 : vector<1x256xi1> to vector<1x256xi1>
    %128 = vector.broadcast %127 : vector<1x256xi1> to vector<4x256xi1>
    %129 = vector.broadcast %cst_58 : f32 to vector<4x256xf32>
    %130 = arith.select %128, %126, %129 : vector<4x256xi1>, vector<4x256xf32>
    %c36 = arith.constant 36 : index
    %c0_59 = arith.constant 0 : index
    %131 = vector.load %arg6[%c36, %c0_59] : memref<196x256xf32, #tpu.memory_space<vmem>>, vector<4x256xf32>
    tpu.vector_store %arg6[%c36, %c0_59], %130 {strides = array<i32>} : memref<196x256xf32, #tpu.memory_space<vmem>>, vector<4x256xf32>,
    %c0_60 = arith.constant 0 : index
    %c19 = arith.constant 19 : index
    %132 = vector.load %arg5[%c0_60, %c19] : memref<4x358xf32, #tpu.memory_space<vmem>>, vector<4x256xf32>
    %c40 = arith.constant 40 : index
    %c0_61 = arith.constant 0 : index
    %133 = vector.load %arg6[%c40, %c0_61] : memref<196x256xf32, #tpu.memory_space<vmem>>, vector<4x256xf32>
    tpu.vector_store %arg6[%c40, %c0_61], %132 {strides = array<i32>} : memref<196x256xf32, #tpu.memory_space<vmem>>, vector<4x256xf32>,
    %c0_62 = arith.constant 0 : index
    %c20_63 = arith.constant 20 : index
    %134 = vector.load %arg5[%c0_62, %c20_63] : memref<4x358xf32, #tpu.memory_space<vmem>>, vector<4x256xf32>
    %cst_64 = arith.constant 0.000000e+00 : f32
    %135 = vector.shape_cast %57 : vector<1x256xi1> to vector<1x256xi1>
    %136 = vector.broadcast %135 : vector<1x256xi1> to vector<4x256xi1>
    %137 = vector.broadcast %cst_64 : f32 to vector<4x256xf32>
    %138 = arith.select %136, %134, %137 : vector<4x256xi1>, vector<4x256xf32>
    %c44 = arith.constant 44 : index
    %c0_65 = arith.constant 0 : index
    %139 = vector.load %arg6[%c44, %c0_65] : memref<196x256xf32, #tpu.memory_space<vmem>>, vector<4x256xf32>
    tpu.vector_store %arg6[%c44, %c0_65], %138 {strides = array<i32>} : memref<196x256xf32, #tpu.memory_space<vmem>>, vector<4x256xf32>,
    %c0_66 = arith.constant 0 : index
    %c21 = arith.constant 21 : index
    %140 = vector.load %arg5[%c0_66, %c21] : memref<4x358xf32, #tpu.memory_space<vmem>>, vector<4x256xf32>
    %cst_67 = arith.constant 0.000000e+00 : f32
    %141 = vector.shape_cast %66 : vector<1x256xi1> to vector<1x256xi1>
    %142 = vector.broadcast %141 : vector<1x256xi1> to vector<4x256xi1>
    %143 = vector.broadcast %cst_67 : f32 to vector<4x256xf32>
    %144 = arith.select %142, %140, %143 : vector<4x256xi1>, vector<4x256xf32>
    %c48 = arith.constant 48 : index
    %c0_68 = arith.constant 0 : index
    %145 = vector.load %arg6[%c48, %c0_68] : memref<196x256xf32, #tpu.memory_space<vmem>>, vector<4x256xf32>
    tpu.vector_store %arg6[%c48, %c0_68], %144 {strides = array<i32>} : memref<196x256xf32, #tpu.memory_space<vmem>>, vector<4x256xf32>,
    %c0_69 = arith.constant 0 : index
    %c22 = arith.constant 22 : index
    %146 = vector.load %arg5[%c0_69, %c22] : memref<4x358xf32, #tpu.memory_space<vmem>>, vector<4x256xf32>
    %cst_70 = arith.constant 0.000000e+00 : f32
    %147 = vector.shape_cast %75 : vector<1x256xi1> to vector<1x256xi1>
    %148 = vector.broadcast %147 : vector<1x256xi1> to vector<4x256xi1>
    %149 = vector.broadcast %cst_70 : f32 to vector<4x256xf32>
    %150 = arith.select %148, %146, %149 : vector<4x256xi1>, vector<4x256xf32>
    %c52 = arith.constant 52 : index
    %c0_71 = arith.constant 0 : index
    %151 = vector.load %arg6[%c52, %c0_71] : memref<196x256xf32, #tpu.memory_space<vmem>>, vector<4x256xf32>
    tpu.vector_store %arg6[%c52, %c0_71], %150 {strides = array<i32>} : memref<196x256xf32, #tpu.memory_space<vmem>>, vector<4x256xf32>,
    %c0_72 = arith.constant 0 : index
    %c32_73 = arith.constant 32 : index
    %152 = vector.load %arg5[%c0_72, %c32_73] : memref<4x358xf32, #tpu.memory_space<vmem>>, vector<4x256xf32>
    %cst_74 = arith.constant 0.000000e+00 : f32
    %153 = vector.shape_cast %30 : vector<1x256xi1> to vector<1x256xi1>
    %154 = vector.broadcast %153 : vector<1x256xi1> to vector<4x256xi1>
    %155 = vector.broadcast %cst_74 : f32 to vector<4x256xf32>
    %156 = arith.select %154, %152, %155 : vector<4x256xi1>, vector<4x256xf32>
    %c56 = arith.constant 56 : index
    %c0_75 = arith.constant 0 : index
    %157 = vector.load %arg6[%c56, %c0_75] : memref<196x256xf32, #tpu.memory_space<vmem>>, vector<4x256xf32>
    tpu.vector_store %arg6[%c56, %c0_75], %156 {strides = array<i32>} : memref<196x256xf32, #tpu.memory_space<vmem>>, vector<4x256xf32>,
    %c0_76 = arith.constant 0 : index
    %c33 = arith.constant 33 : index
    %158 = vector.load %arg5[%c0_76, %c33] : memref<4x358xf32, #tpu.memory_space<vmem>>, vector<4x256xf32>
    %cst_77 = arith.constant 0.000000e+00 : f32
    %159 = vector.shape_cast %39 : vector<1x256xi1> to vector<1x256xi1>
    %160 = vector.broadcast %159 : vector<1x256xi1> to vector<4x256xi1>
    %161 = vector.broadcast %cst_77 : f32 to vector<4x256xf32>
    %162 = arith.select %160, %158, %161 : vector<4x256xi1>, vector<4x256xf32>
    %c60 = arith.constant 60 : index
    %c0_78 = arith.constant 0 : index
    %163 = vector.load %arg6[%c60, %c0_78] : memref<196x256xf32, #tpu.memory_space<vmem>>, vector<4x256xf32>
    tpu.vector_store %arg6[%c60, %c0_78], %162 {strides = array<i32>} : memref<196x256xf32, #tpu.memory_space<vmem>>, vector<4x256xf32>,
    %c0_79 = arith.constant 0 : index
    %c34 = arith.constant 34 : index
    %164 = vector.load %arg5[%c0_79, %c34] : memref<4x358xf32, #tpu.memory_space<vmem>>, vector<4x256xf32>
    %cst_80 = arith.constant 0.000000e+00 : f32
    %165 = vector.shape_cast %48 : vector<1x256xi1> to vector<1x256xi1>
    %166 = vector.broadcast %165 : vector<1x256xi1> to vector<4x256xi1>
    %167 = vector.broadcast %cst_80 : f32 to vector<4x256xf32>
    %168 = arith.select %166, %164, %167 : vector<4x256xi1>, vector<4x256xf32>
    %c64 = arith.constant 64 : index
    %c0_81 = arith.constant 0 : index
    %169 = vector.load %arg6[%c64, %c0_81] : memref<196x256xf32, #tpu.memory_space<vmem>>, vector<4x256xf32>
    tpu.vector_store %arg6[%c64, %c0_81], %168 {strides = array<i32>} : memref<196x256xf32, #tpu.memory_space<vmem>>, vector<4x256xf32>,
    %c0_82 = arith.constant 0 : index
    %c35 = arith.constant 35 : index
    %170 = vector.load %arg5[%c0_82, %c35] : memref<4x358xf32, #tpu.memory_space<vmem>>, vector<4x256xf32>
    %c68 = arith.constant 68 : index
    %c0_83 = arith.constant 0 : index
    %171 = vector.load %arg6[%c68, %c0_83] : memref<196x256xf32, #tpu.memory_space<vmem>>, vector<4x256xf32>
    tpu.vector_store %arg6[%c68, %c0_83], %170 {strides = array<i32>} : memref<196x256xf32, #tpu.memory_space<vmem>>, vector<4x256xf32>,
    %c0_84 = arith.constant 0 : index
    %c36_85 = arith.constant 36 : index
    %172 = vector.load %arg5[%c0_84, %c36_85] : memref<4x358xf32, #tpu.memory_space<vmem>>, vector<4x256xf32>
    %cst_86 = arith.constant 0.000000e+00 : f32
    %173 = vector.shape_cast %57 : vector<1x256xi1> to vector<1x256xi1>
    %174 = vector.broadcast %173 : vector<1x256xi1> to vector<4x256xi1>
    %175 = vector.broadcast %cst_86 : f32 to vector<4x256xf32>
    %176 = arith.select %174, %172, %175 : vector<4x256xi1>, vector<4x256xf32>
    %c72 = arith.constant 72 : index
    %c0_87 = arith.constant 0 : index
    %177 = vector.load %arg6[%c72, %c0_87] : memref<196x256xf32, #tpu.memory_space<vmem>>, vector<4x256xf32>
    tpu.vector_store %arg6[%c72, %c0_87], %176 {strides = array<i32>} : memref<196x256xf32, #tpu.memory_space<vmem>>, vector<4x256xf32>,
    %c0_88 = arith.constant 0 : index
    %c37 = arith.constant 37 : index
    %178 = vector.load %arg5[%c0_88, %c37] : memref<4x358xf32, #tpu.memory_space<vmem>>, vector<4x256xf32>
    %cst_89 = arith.constant 0.000000e+00 : f32
    %179 = vector.shape_cast %66 : vector<1x256xi1> to vector<1x256xi1>
    %180 = vector.broadcast %179 : vector<1x256xi1> to vector<4x256xi1>
    %181 = vector.broadcast %cst_89 : f32 to vector<4x256xf32>
    %182 = arith.select %180, %178, %181 : vector<4x256xi1>, vector<4x256xf32>
    %c76 = arith.constant 76 : index
    %c0_90 = arith.constant 0 : index
    %183 = vector.load %arg6[%c76, %c0_90] : memref<196x256xf32, #tpu.memory_space<vmem>>, vector<4x256xf32>
    tpu.vector_store %arg6[%c76, %c0_90], %182 {strides = array<i32>} : memref<196x256xf32, #tpu.memory_space<vmem>>, vector<4x256xf32>,
    %c0_91 = arith.constant 0 : index
    %c38 = arith.constant 38 : index
    %184 = vector.load %arg5[%c0_91, %c38] : memref<4x358xf32, #tpu.memory_space<vmem>>, vector<4x256xf32>
    %cst_92 = arith.constant 0.000000e+00 : f32
    %185 = vector.shape_cast %75 : vector<1x256xi1> to vector<1x256xi1>
    %186 = vector.broadcast %185 : vector<1x256xi1> to vector<4x256xi1>
    %187 = vector.broadcast %cst_92 : f32 to vector<4x256xf32>
    %188 = arith.select %186, %184, %187 : vector<4x256xi1>, vector<4x256xf32>
    %c80 = arith.constant 80 : index
    %c0_93 = arith.constant 0 : index
    %189 = vector.load %arg6[%c80, %c0_93] : memref<196x256xf32, #tpu.memory_space<vmem>>, vector<4x256xf32>
    tpu.vector_store %arg6[%c80, %c0_93], %188 {strides = array<i32>} : memref<196x256xf32, #tpu.memory_space<vmem>>, vector<4x256xf32>,
    %c0_94 = arith.constant 0 : index
    %c48_95 = arith.constant 48 : index
    %190 = vector.load %arg5[%c0_94, %c48_95] : memref<4x358xf32, #tpu.memory_space<vmem>>, vector<4x256xf32>
    %cst_96 = arith.constant 0.000000e+00 : f32
    %191 = vector.shape_cast %30 : vector<1x256xi1> to vector<1x256xi1>
    %192 = vector.broadcast %191 : vector<1x256xi1> to vector<4x256xi1>
    %193 = vector.broadcast %cst_96 : f32 to vector<4x256xf32>
    %194 = arith.select %192, %190, %193 : vector<4x256xi1>, vector<4x256xf32>
    %c84 = arith.constant 84 : index
    %c0_97 = arith.constant 0 : index
    %195 = vector.load %arg6[%c84, %c0_97] : memref<196x256xf32, #tpu.memory_space<vmem>>, vector<4x256xf32>
    tpu.vector_store %arg6[%c84, %c0_97], %194 {strides = array<i32>} : memref<196x256xf32, #tpu.memory_space<vmem>>, vector<4x256xf32>,
    %c0_98 = arith.constant 0 : index
    %c49 = arith.constant 49 : index
    %196 = vector.load %arg5[%c0_98, %c49] : memref<4x358xf32, #tpu.memory_space<vmem>>, vector<4x256xf32>
    %cst_99 = arith.constant 0.000000e+00 : f32
    %197 = vector.shape_cast %39 : vector<1x256xi1> to vector<1x256xi1>
    %198 = vector.broadcast %197 : vector<1x256xi1> to vector<4x256xi1>
    %199 = vector.broadcast %cst_99 : f32 to vector<4x256xf32>
    %200 = arith.select %198, %196, %199 : vector<4x256xi1>, vector<4x256xf32>
    %c88 = arith.constant 88 : index
    %c0_100 = arith.constant 0 : index
    %201 = vector.load %arg6[%c88, %c0_100] : memref<196x256xf32, #tpu.memory_space<vmem>>, vector<4x256xf32>
    tpu.vector_store %arg6[%c88, %c0_100], %200 {strides = array<i32>} : memref<196x256xf32, #tpu.memory_space<vmem>>, vector<4x256xf32>,
    %c0_101 = arith.constant 0 : index
    %c50 = arith.constant 50 : index
    %202 = vector.load %arg5[%c0_101, %c50] : memref<4x358xf32, #tpu.memory_space<vmem>>, vector<4x256xf32>
    %cst_102 = arith.constant 0.000000e+00 : f32
    %203 = vector.shape_cast %48 : vector<1x256xi1> to vector<1x256xi1>
    %204 = vector.broadcast %203 : vector<1x256xi1> to vector<4x256xi1>
    %205 = vector.broadcast %cst_102 : f32 to vector<4x256xf32>
    %206 = arith.select %204, %202, %205 : vector<4x256xi1>, vector<4x256xf32>
    %c92 = arith.constant 92 : index
    %c0_103 = arith.constant 0 : index
    %207 = vector.load %arg6[%c92, %c0_103] : memref<196x256xf32, #tpu.memory_space<vmem>>, vector<4x256xf32>
    tpu.vector_store %arg6[%c92, %c0_103], %206 {strides = array<i32>} : memref<196x256xf32, #tpu.memory_space<vmem>>, vector<4x256xf32>,
    %c0_104 = arith.constant 0 : index
    %c51_105 = arith.constant 51 : index
    %208 = vector.load %arg5[%c0_104, %c51_105] : memref<4x358xf32, #tpu.memory_space<vmem>>, vector<4x256xf32>
    %c96 = arith.constant 96 : index
    %c0_106 = arith.constant 0 : index
    %209 = vector.load %arg6[%c96, %c0_106] : memref<196x256xf32, #tpu.memory_space<vmem>>, vector<4x256xf32>
    tpu.vector_store %arg6[%c96, %c0_106], %208 {strides = array<i32>} : memref<196x256xf32, #tpu.memory_space<vmem>>, vector<4x256xf32>,
    %c0_107 = arith.constant 0 : index
    %c52_108 = arith.constant 52 : index
    %210 = vector.load %arg5[%c0_107, %c52_108] : memref<4x358xf32, #tpu.memory_space<vmem>>, vector<4x256xf32>
    %cst_109 = arith.constant 0.000000e+00 : f32
    %211 = vector.shape_cast %57 : vector<1x256xi1> to vector<1x256xi1>
    %212 = vector.broadcast %211 : vector<1x256xi1> to vector<4x256xi1>
    %213 = vector.broadcast %cst_109 : f32 to vector<4x256xf32>
    %214 = arith.select %212, %210, %213 : vector<4x256xi1>, vector<4x256xf32>
    %c100 = arith.constant 100 : index
    %c0_110 = arith.constant 0 : index
    %215 = vector.load %arg6[%c100, %c0_110] : memref<196x256xf32, #tpu.memory_space<vmem>>, vector<4x256xf32>
    tpu.vector_store %arg6[%c100, %c0_110], %214 {strides = array<i32>} : memref<196x256xf32, #tpu.memory_space<vmem>>, vector<4x256xf32>,
    %c0_111 = arith.constant 0 : index
    %c53 = arith.constant 53 : index
    %216 = vector.load %arg5[%c0_111, %c53] : memref<4x358xf32, #tpu.memory_space<vmem>>, vector<4x256xf32>
    %cst_112 = arith.constant 0.000000e+00 : f32
    %217 = vector.shape_cast %66 : vector<1x256xi1> to vector<1x256xi1>
    %218 = vector.broadcast %217 : vector<1x256xi1> to vector<4x256xi1>
    %219 = vector.broadcast %cst_112 : f32 to vector<4x256xf32>
    %220 = arith.select %218, %216, %219 : vector<4x256xi1>, vector<4x256xf32>
    %c104 = arith.constant 104 : index
    %c0_113 = arith.constant 0 : index
    %221 = vector.load %arg6[%c104, %c0_113] : memref<196x256xf32, #tpu.memory_space<vmem>>, vector<4x256xf32>
    tpu.vector_store %arg6[%c104, %c0_113], %220 {strides = array<i32>} : memref<196x256xf32, #tpu.memory_space<vmem>>, vector<4x256xf32>,
    %c0_114 = arith.constant 0 : index
    %c54 = arith.constant 54 : index
    %222 = vector.load %arg5[%c0_114, %c54] : memref<4x358xf32, #tpu.memory_space<vmem>>, vector<4x256xf32>
    %cst_115 = arith.constant 0.000000e+00 : f32
    %223 = vector.shape_cast %75 : vector<1x256xi1> to vector<1x256xi1>
    %224 = vector.broadcast %223 : vector<1x256xi1> to vector<4x256xi1>
    %225 = vector.broadcast %cst_115 : f32 to vector<4x256xf32>
    %226 = arith.select %224, %222, %225 : vector<4x256xi1>, vector<4x256xf32>
    %c108 = arith.constant 108 : index
    %c0_116 = arith.constant 0 : index
    %227 = vector.load %arg6[%c108, %c0_116] : memref<196x256xf32, #tpu.memory_space<vmem>>, vector<4x256xf32>
    tpu.vector_store %arg6[%c108, %c0_116], %226 {strides = array<i32>} : memref<196x256xf32, #tpu.memory_space<vmem>>, vector<4x256xf32>,
    %c0_117 = arith.constant 0 : index
    %c64_118 = arith.constant 64 : index
    %228 = vector.load %arg5[%c0_117, %c64_118] : memref<4x358xf32, #tpu.memory_space<vmem>>, vector<4x256xf32>
    %cst_119 = arith.constant 0.000000e+00 : f32
    %229 = vector.shape_cast %30 : vector<1x256xi1> to vector<1x256xi1>
    %230 = vector.broadcast %229 : vector<1x256xi1> to vector<4x256xi1>
    %231 = vector.broadcast %cst_119 : f32 to vector<4x256xf32>
    %232 = arith.select %230, %228, %231 : vector<4x256xi1>, vector<4x256xf32>
    %c112 = arith.constant 112 : index
    %c0_120 = arith.constant 0 : index
    %233 = vector.load %arg6[%c112, %c0_120] : memref<196x256xf32, #tpu.memory_space<vmem>>, vector<4x256xf32>
    tpu.vector_store %arg6[%c112, %c0_120], %232 {strides = array<i32>} : memref<196x256xf32, #tpu.memory_space<vmem>>, vector<4x256xf32>,
    %c0_121 = arith.constant 0 : index
    %c65 = arith.constant 65 : index
    %234 = vector.load %arg5[%c0_121, %c65] : memref<4x358xf32, #tpu.memory_space<vmem>>, vector<4x256xf32>
    %cst_122 = arith.constant 0.000000e+00 : f32
    %235 = vector.shape_cast %39 : vector<1x256xi1> to vector<1x256xi1>
    %236 = vector.broadcast %235 : vector<1x256xi1> to vector<4x256xi1>
    %237 = vector.broadcast %cst_122 : f32 to vector<4x256xf32>
    %238 = arith.select %236, %234, %237 : vector<4x256xi1>, vector<4x256xf32>
    %c116 = arith.constant 116 : index
    %c0_123 = arith.constant 0 : index
    %239 = vector.load %arg6[%c116, %c0_123] : memref<196x256xf32, #tpu.memory_space<vmem>>, vector<4x256xf32>
    tpu.vector_store %arg6[%c116, %c0_123], %238 {strides = array<i32>} : memref<196x256xf32, #tpu.memory_space<vmem>>, vector<4x256xf32>,
    %c0_124 = arith.constant 0 : index
    %c66 = arith.constant 66 : index
    %240 = vector.load %arg5[%c0_124, %c66] : memref<4x358xf32, #tpu.memory_space<vmem>>, vector<4x256xf32>
    %cst_125 = arith.constant 0.000000e+00 : f32
    %241 = vector.shape_cast %48 : vector<1x256xi1> to vector<1x256xi1>
    %242 = vector.broadcast %241 : vector<1x256xi1> to vector<4x256xi1>
    %243 = vector.broadcast %cst_125 : f32 to vector<4x256xf32>
    %244 = arith.select %242, %240, %243 : vector<4x256xi1>, vector<4x256xf32>
    %c120 = arith.constant 120 : index
    %c0_126 = arith.constant 0 : index
    %245 = vector.load %arg6[%c120, %c0_126] : memref<196x256xf32, #tpu.memory_space<vmem>>, vector<4x256xf32>
    tpu.vector_store %arg6[%c120, %c0_126], %244 {strides = array<i32>} : memref<196x256xf32, #tpu.memory_space<vmem>>, vector<4x256xf32>,
    %c0_127 = arith.constant 0 : index
    %c67 = arith.constant 67 : index
    %246 = vector.load %arg5[%c0_127, %c67] : memref<4x358xf32, #tpu.memory_space<vmem>>, vector<4x256xf32>
    %c124 = arith.constant 124 : index
    %c0_128 = arith.constant 0 : index
    %247 = vector.load %arg6[%c124, %c0_128] : memref<196x256xf32, #tpu.memory_space<vmem>>, vector<4x256xf32>
    tpu.vector_store %arg6[%c124, %c0_128], %246 {strides = array<i32>} : memref<196x256xf32, #tpu.memory_space<vmem>>, vector<4x256xf32>,
    %c0_129 = arith.constant 0 : index
    %c68_130 = arith.constant 68 : index
    %248 = vector.load %arg5[%c0_129, %c68_130] : memref<4x358xf32, #tpu.memory_space<vmem>>, vector<4x256xf32>
    %cst_131 = arith.constant 0.000000e+00 : f32
    %249 = vector.shape_cast %57 : vector<1x256xi1> to vector<1x256xi1>
    %250 = vector.broadcast %249 : vector<1x256xi1> to vector<4x256xi1>
    %251 = vector.broadcast %cst_131 : f32 to vector<4x256xf32>
    %252 = arith.select %250, %248, %251 : vector<4x256xi1>, vector<4x256xf32>
    %c128 = arith.constant 128 : index
    %c0_132 = arith.constant 0 : index
    %253 = vector.load %arg6[%c128, %c0_132] : memref<196x256xf32, #tpu.memory_space<vmem>>, vector<4x256xf32>
    tpu.vector_store %arg6[%c128, %c0_132], %252 {strides = array<i32>} : memref<196x256xf32, #tpu.memory_space<vmem>>, vector<4x256xf32>,
    %c0_133 = arith.constant 0 : index
    %c69 = arith.constant 69 : index
    %254 = vector.load %arg5[%c0_133, %c69] : memref<4x358xf32, #tpu.memory_space<vmem>>, vector<4x256xf32>
    %cst_134 = arith.constant 0.000000e+00 : f32
    %255 = vector.shape_cast %66 : vector<1x256xi1> to vector<1x256xi1>
    %256 = vector.broadcast %255 : vector<1x256xi1> to vector<4x256xi1>
    %257 = vector.broadcast %cst_134 : f32 to vector<4x256xf32>
    %258 = arith.select %256, %254, %257 : vector<4x256xi1>, vector<4x256xf32>
    %c132 = arith.constant 132 : index
    %c0_135 = arith.constant 0 : index
    %259 = vector.load %arg6[%c132, %c0_135] : memref<196x256xf32, #tpu.memory_space<vmem>>, vector<4x256xf32>
    tpu.vector_store %arg6[%c132, %c0_135], %258 {strides = array<i32>} : memref<196x256xf32, #tpu.memory_space<vmem>>, vector<4x256xf32>,
    %c0_136 = arith.constant 0 : index
    %c70 = arith.constant 70 : index
    %260 = vector.load %arg5[%c0_136, %c70] : memref<4x358xf32, #tpu.memory_space<vmem>>, vector<4x256xf32>
    %cst_137 = arith.constant 0.000000e+00 : f32
    %261 = vector.shape_cast %75 : vector<1x256xi1> to vector<1x256xi1>
    %262 = vector.broadcast %261 : vector<1x256xi1> to vector<4x256xi1>
    %263 = vector.broadcast %cst_137 : f32 to vector<4x256xf32>
    %264 = arith.select %262, %260, %263 : vector<4x256xi1>, vector<4x256xf32>
    %c136 = arith.constant 136 : index
    %c0_138 = arith.constant 0 : index
    %265 = vector.load %arg6[%c136, %c0_138] : memref<196x256xf32, #tpu.memory_space<vmem>>, vector<4x256xf32>
    tpu.vector_store %arg6[%c136, %c0_138], %264 {strides = array<i32>} : memref<196x256xf32, #tpu.memory_space<vmem>>, vector<4x256xf32>,
    %c0_139 = arith.constant 0 : index
    %c80_140 = arith.constant 80 : index
    %266 = vector.load %arg5[%c0_139, %c80_140] : memref<4x358xf32, #tpu.memory_space<vmem>>, vector<4x256xf32>
    %cst_141 = arith.constant 0.000000e+00 : f32
    %267 = vector.shape_cast %30 : vector<1x256xi1> to vector<1x256xi1>
    %268 = vector.broadcast %267 : vector<1x256xi1> to vector<4x256xi1>
    %269 = vector.broadcast %cst_141 : f32 to vector<4x256xf32>
    %270 = arith.select %268, %266, %269 : vector<4x256xi1>, vector<4x256xf32>
    %c140 = arith.constant 140 : index
    %c0_142 = arith.constant 0 : index
    %271 = vector.load %arg6[%c140, %c0_142] : memref<196x256xf32, #tpu.memory_space<vmem>>, vector<4x256xf32>
    tpu.vector_store %arg6[%c140, %c0_142], %270 {strides = array<i32>} : memref<196x256xf32, #tpu.memory_space<vmem>>, vector<4x256xf32>,
    %c0_143 = arith.constant 0 : index
    %c81 = arith.constant 81 : index
    %272 = vector.load %arg5[%c0_143, %c81] : memref<4x358xf32, #tpu.memory_space<vmem>>, vector<4x256xf32>
    %cst_144 = arith.constant 0.000000e+00 : f32
    %273 = vector.shape_cast %39 : vector<1x256xi1> to vector<1x256xi1>
    %274 = vector.broadcast %273 : vector<1x256xi1> to vector<4x256xi1>
    %275 = vector.broadcast %cst_144 : f32 to vector<4x256xf32>
    %276 = arith.select %274, %272, %275 : vector<4x256xi1>, vector<4x256xf32>
    %c144 = arith.constant 144 : index
    %c0_145 = arith.constant 0 : index
    %277 = vector.load %arg6[%c144, %c0_145] : memref<196x256xf32, #tpu.memory_space<vmem>>, vector<4x256xf32>
    tpu.vector_store %arg6[%c144, %c0_145], %276 {strides = array<i32>} : memref<196x256xf32, #tpu.memory_space<vmem>>, vector<4x256xf32>,
    %c0_146 = arith.constant 0 : index
    %c82 = arith.constant 82 : index
    %278 = vector.load %arg5[%c0_146, %c82] : memref<4x358xf32, #tpu.memory_space<vmem>>, vector<4x256xf32>
    %cst_147 = arith.constant 0.000000e+00 : f32
    %279 = vector.shape_cast %48 : vector<1x256xi1> to vector<1x256xi1>
    %280 = vector.broadcast %279 : vector<1x256xi1> to vector<4x256xi1>
    %281 = vector.broadcast %cst_147 : f32 to vector<4x256xf32>
    %282 = arith.select %280, %278, %281 : vector<4x256xi1>, vector<4x256xf32>
    %c148 = arith.constant 148 : index
    %c0_148 = arith.constant 0 : index
    %283 = vector.load %arg6[%c148, %c0_148] : memref<196x256xf32, #tpu.memory_space<vmem>>, vector<4x256xf32>
    tpu.vector_store %arg6[%c148, %c0_148], %282 {strides = array<i32>} : memref<196x256xf32, #tpu.memory_space<vmem>>, vector<4x256xf32>,
    %c0_149 = arith.constant 0 : index
    %c83 = arith.constant 83 : index
    %284 = vector.load %arg5[%c0_149, %c83] : memref<4x358xf32, #tpu.memory_space<vmem>>, vector<4x256xf32>
    %c152 = arith.constant 152 : index
    %c0_150 = arith.constant 0 : index
    %285 = vector.load %arg6[%c152, %c0_150] : memref<196x256xf32, #tpu.memory_space<vmem>>, vector<4x256xf32>
    tpu.vector_store %arg6[%c152, %c0_150], %284 {strides = array<i32>} : memref<196x256xf32, #tpu.memory_space<vmem>>, vector<4x256xf32>,
    %c0_151 = arith.constant 0 : index
    %c84_152 = arith.constant 84 : index
    %286 = vector.load %arg5[%c0_151, %c84_152] : memref<4x358xf32, #tpu.memory_space<vmem>>, vector<4x256xf32>
    %cst_153 = arith.constant 0.000000e+00 : f32
    %287 = vector.shape_cast %57 : vector<1x256xi1> to vector<1x256xi1>
    %288 = vector.broadcast %287 : vector<1x256xi1> to vector<4x256xi1>
    %289 = vector.broadcast %cst_153 : f32 to vector<4x256xf32>
    %290 = arith.select %288, %286, %289 : vector<4x256xi1>, vector<4x256xf32>
    %c156 = arith.constant 156 : index
    %c0_154 = arith.constant 0 : index
    %291 = vector.load %arg6[%c156, %c0_154] : memref<196x256xf32, #tpu.memory_space<vmem>>, vector<4x256xf32>
    tpu.vector_store %arg6[%c156, %c0_154], %290 {strides = array<i32>} : memref<196x256xf32, #tpu.memory_space<vmem>>, vector<4x256xf32>,
    %c0_155 = arith.constant 0 : index
    %c85 = arith.constant 85 : index
    %292 = vector.load %arg5[%c0_155, %c85] : memref<4x358xf32, #tpu.memory_space<vmem>>, vector<4x256xf32>
    %cst_156 = arith.constant 0.000000e+00 : f32
    %293 = vector.shape_cast %66 : vector<1x256xi1> to vector<1x256xi1>
    %294 = vector.broadcast %293 : vector<1x256xi1> to vector<4x256xi1>
    %295 = vector.broadcast %cst_156 : f32 to vector<4x256xf32>
    %296 = arith.select %294, %292, %295 : vector<4x256xi1>, vector<4x256xf32>
    %c160 = arith.constant 160 : index
    %c0_157 = arith.constant 0 : index
    %297 = vector.load %arg6[%c160, %c0_157] : memref<196x256xf32, #tpu.memory_space<vmem>>, vector<4x256xf32>
    tpu.vector_store %arg6[%c160, %c0_157], %296 {strides = array<i32>} : memref<196x256xf32, #tpu.memory_space<vmem>>, vector<4x256xf32>,
    %c0_158 = arith.constant 0 : index
    %c86 = arith.constant 86 : index
    %298 = vector.load %arg5[%c0_158, %c86] : memref<4x358xf32, #tpu.memory_space<vmem>>, vector<4x256xf32>
    %cst_159 = arith.constant 0.000000e+00 : f32
    %299 = vector.shape_cast %75 : vector<1x256xi1> to vector<1x256xi1>
    %300 = vector.broadcast %299 : vector<1x256xi1> to vector<4x256xi1>
    %301 = vector.broadcast %cst_159 : f32 to vector<4x256xf32>
    %302 = arith.select %300, %298, %301 : vector<4x256xi1>, vector<4x256xf32>
    %c164 = arith.constant 164 : index
    %c0_160 = arith.constant 0 : index
    %303 = vector.load %arg6[%c164, %c0_160] : memref<196x256xf32, #tpu.memory_space<vmem>>, vector<4x256xf32>
    tpu.vector_store %arg6[%c164, %c0_160], %302 {strides = array<i32>} : memref<196x256xf32, #tpu.memory_space<vmem>>, vector<4x256xf32>,
    %c0_161 = arith.constant 0 : index
    %c96_162 = arith.constant 96 : index
    %304 = vector.load %arg5[%c0_161, %c96_162] : memref<4x358xf32, #tpu.memory_space<vmem>>, vector<4x256xf32>
    %cst_163 = arith.constant 0.000000e+00 : f32
    %305 = vector.shape_cast %30 : vector<1x256xi1> to vector<1x256xi1>
    %306 = vector.broadcast %305 : vector<1x256xi1> to vector<4x256xi1>
    %307 = vector.broadcast %cst_163 : f32 to vector<4x256xf32>
    %308 = arith.select %306, %304, %307 : vector<4x256xi1>, vector<4x256xf32>
    %c168 = arith.constant 168 : index
    %c0_164 = arith.constant 0 : index
    %309 = vector.load %arg6[%c168, %c0_164] : memref<196x256xf32, #tpu.memory_space<vmem>>, vector<4x256xf32>
    tpu.vector_store %arg6[%c168, %c0_164], %308 {strides = array<i32>} : memref<196x256xf32, #tpu.memory_space<vmem>>, vector<4x256xf32>,
    %c0_165 = arith.constant 0 : index
    %c97 = arith.constant 97 : index
    %310 = vector.load %arg5[%c0_165, %c97] : memref<4x358xf32, #tpu.memory_space<vmem>>, vector<4x256xf32>
    %cst_166 = arith.constant 0.000000e+00 : f32
    %311 = vector.shape_cast %39 : vector<1x256xi1> to vector<1x256xi1>
    %312 = vector.broadcast %311 : vector<1x256xi1> to vector<4x256xi1>
    %313 = vector.broadcast %cst_166 : f32 to vector<4x256xf32>
    %314 = arith.select %312, %310, %313 : vector<4x256xi1>, vector<4x256xf32>
    %c172 = arith.constant 172 : index
    %c0_167 = arith.constant 0 : index
    %315 = vector.load %arg6[%c172, %c0_167] : memref<196x256xf32, #tpu.memory_space<vmem>>, vector<4x256xf32>
    tpu.vector_store %arg6[%c172, %c0_167], %314 {strides = array<i32>} : memref<196x256xf32, #tpu.memory_space<vmem>>, vector<4x256xf32>,
    %c0_168 = arith.constant 0 : index
    %c98 = arith.constant 98 : index
    %316 = vector.load %arg5[%c0_168, %c98] : memref<4x358xf32, #tpu.memory_space<vmem>>, vector<4x256xf32>
    %cst_169 = arith.constant 0.000000e+00 : f32
    %317 = vector.shape_cast %48 : vector<1x256xi1> to vector<1x256xi1>
    %318 = vector.broadcast %317 : vector<1x256xi1> to vector<4x256xi1>
    %319 = vector.broadcast %cst_169 : f32 to vector<4x256xf32>
    %320 = arith.select %318, %316, %319 : vector<4x256xi1>, vector<4x256xf32>
    %c176 = arith.constant 176 : index
    %c0_170 = arith.constant 0 : index
    %321 = vector.load %arg6[%c176, %c0_170] : memref<196x256xf32, #tpu.memory_space<vmem>>, vector<4x256xf32>
    tpu.vector_store %arg6[%c176, %c0_170], %320 {strides = array<i32>} : memref<196x256xf32, #tpu.memory_space<vmem>>, vector<4x256xf32>,
    %c0_171 = arith.constant 0 : index
    %c99 = arith.constant 99 : index
    %322 = vector.load %arg5[%c0_171, %c99] : memref<4x358xf32, #tpu.memory_space<vmem>>, vector<4x256xf32>
    %c180 = arith.constant 180 : index
    %c0_172 = arith.constant 0 : index
    %323 = vector.load %arg6[%c180, %c0_172] : memref<196x256xf32, #tpu.memory_space<vmem>>, vector<4x256xf32>
    tpu.vector_store %arg6[%c180, %c0_172], %322 {strides = array<i32>} : memref<196x256xf32, #tpu.memory_space<vmem>>, vector<4x256xf32>,
    %c0_173 = arith.constant 0 : index
    %c100_174 = arith.constant 100 : index
    %324 = vector.load %arg5[%c0_173, %c100_174] : memref<4x358xf32, #tpu.memory_space<vmem>>, vector<4x256xf32>
    %cst_175 = arith.constant 0.000000e+00 : f32
    %325 = vector.shape_cast %57 : vector<1x256xi1> to vector<1x256xi1>
    %326 = vector.broadcast %325 : vector<1x256xi1> to vector<4x256xi1>
    %327 = vector.broadcast %cst_175 : f32 to vector<4x256xf32>
    %328 = arith.select %326, %324, %327 : vector<4x256xi1>, vector<4x256xf32>
    %c184 = arith.constant 184 : index
    %c0_176 = arith.constant 0 : index
    %329 = vector.load %arg6[%c184, %c0_176] : memref<196x256xf32, #tpu.memory_space<vmem>>, vector<4x256xf32>
    tpu.vector_store %arg6[%c184, %c0_176], %328 {strides = array<i32>} : memref<196x256xf32, #tpu.memory_space<vmem>>, vector<4x256xf32>,
    %c0_177 = arith.constant 0 : index
    %c101 = arith.constant 101 : index
    %330 = vector.load %arg5[%c0_177, %c101] : memref<4x358xf32, #tpu.memory_space<vmem>>, vector<4x256xf32>
    %cst_178 = arith.constant 0.000000e+00 : f32
    %331 = vector.shape_cast %66 : vector<1x256xi1> to vector<1x256xi1>
    %332 = vector.broadcast %331 : vector<1x256xi1> to vector<4x256xi1>
    %333 = vector.broadcast %cst_178 : f32 to vector<4x256xf32>
    %334 = arith.select %332, %330, %333 : vector<4x256xi1>, vector<4x256xf32>
    %c188 = arith.constant 188 : index
    %c0_179 = arith.constant 0 : index
    %335 = vector.load %arg6[%c188, %c0_179] : memref<196x256xf32, #tpu.memory_space<vmem>>, vector<4x256xf32>
    tpu.vector_store %arg6[%c188, %c0_179], %334 {strides = array<i32>} : memref<196x256xf32, #tpu.memory_space<vmem>>, vector<4x256xf32>,
    %c0_180 = arith.constant 0 : index
    %c102 = arith.constant 102 : index
    %336 = vector.load %arg5[%c0_180, %c102] : memref<4x358xf32, #tpu.memory_space<vmem>>, vector<4x256xf32>
    %cst_181 = arith.constant 0.000000e+00 : f32
    %337 = vector.shape_cast %75 : vector<1x256xi1> to vector<1x256xi1>
    %338 = vector.broadcast %337 : vector<1x256xi1> to vector<4x256xi1>
    %339 = vector.broadcast %cst_181 : f32 to vector<4x256xf32>
    %340 = arith.select %338, %336, %339 : vector<4x256xi1>, vector<4x256xf32>
    %c192 = arith.constant 192 : index
    %c0_182 = arith.constant 0 : index
    %341 = vector.load %arg6[%c192, %c0_182] : memref<196x256xf32, #tpu.memory_space<vmem>>, vector<4x256xf32>
    tpu.vector_store %arg6[%c192, %c0_182], %340 {strides = array<i32>} : memref<196x256xf32, #tpu.memory_space<vmem>>, vector<4x256xf32>,
    %c0_183 = arith.constant 0 : index
    %c0_184 = arith.constant 0 : index
    %342 = vector.load %arg1[%c0_183, %c0_184] : memref<4x196xf32, #tpu.memory_space<vmem>>, vector<4x196xf32>
    %c0_185 = arith.constant 0 : index
    %c0_186 = arith.constant 0 : index
    %343 = vector.load %arg6[%c0_185, %c0_186] : memref<196x256xf32, #tpu.memory_space<vmem>>, vector<196x256xf32>
    %cst_187 = arith.constant dense<0.000000e+00> : vector<4x256xf32>
    %344 = tpu.matmul %342, %343, %cst_187 {dimension_numbers = #tpu.dot_dimension_numbers<[1], [0], [0], [1], [0, 0, 1, 1], [], []>} : vector<4x196xf32>, vector<196x256xf32>, vector<4x256xf32> -> vector<4x256xf32>
    %c0_188 = arith.constant 0 : index
    %c0_189 = arith.constant 0 : index
    %345 = vector.load %arg2[%c0_188, %c0_189] : memref<4x1xf32, #tpu.memory_space<vmem>>, vector<4x1xf32>
    %346 = vector.broadcast %345 : vector<4x1xf32> to vector<4x256xf32>
    %347 = arith.addf %344, %346 : vector<4x256xf32>
    %c0_190 = arith.constant 0 : index
    %c0_191 = arith.constant 0 : index
    %c0_192 = arith.constant 0 : index
    %348 = vector.load %arg4[%c0_190, %c0_191, %c0_192] : memref<1x4x256xf32, #tpu.memory_space<vmem>>, vector<1x4x256xf32>
    %349 = vector.shape_cast %348 : vector<1x4x256xf32> to vector<4x256xf32>
    %350 = vector.shape_cast %347 : vector<4x256xf32> to vector<1x4x256xf32>
    tpu.vector_store %arg4[%c0_190, %c0_191, %c0_192], %350 {strides = array<i32>} : memref<1x4x256xf32, #tpu.memory_space<vmem>>, vector<1x4x256xf32>,
    return
  }
  func.func @transform_0(%arg0: i32) -> (i32, i32) {
    %c0_i32 = arith.constant 0 : i32
    %c0_i32_0 = arith.constant 0 : i32
    %c0_i32_1 = arith.constant 0 : i32
    return %c0_i32, %c0_i32_0 : i32, i32
  }
  func.func @transform_1(%arg0: i32) -> (i32, i32) {
    %c0_i32 = arith.constant 0 : i32
    %c0_i32_0 = arith.constant 0 : i32
    %c0_i32_1 = arith.constant 0 : i32
    return %c0_i32, %c0_i32_0 : i32, i32
  }
  func.func @transform_2(%arg0: i32) -> (i32, i32, i32) {
    %c0_i32 = arith.constant 0 : i32
    %c0_i32_0 = arith.constant 0 : i32
    %c0_i32_1 = arith.constant 0 : i32
    return %arg0, %c0_i32, %c0_i32_0 : i32, i32, i32
  }
  func.func @transform_3(%arg0: i32) -> (i32, i32, i32) {
    %c0_i32 = arith.constant 0 : i32
    %c0_i32_0 = arith.constant 0 : i32
    %c0_i32_1 = arith.constant 0 : i32
    return %arg0, %c0_i32, %c0_i32_0 : i32, i32, i32
  }
}

</mosaic_0001>

<bundles_post_ra>
// kernel: tpu_custom_call.1
= control target key start
LH: loop header
LB: loop body
LE: loop exit
PB: predicated region body
PF: predicated region fallthrough
CT: control target
= control target key end

     0   :  { %8 = vsyncpa [#allocation5], 0  ;;  %s2818_s0 = inlined_call_operand.hbm [shape: f32[4,196], index: 0, kind: input, shape index: {}]   ;;  %s2819_s1 = inlined_call_operand.vmem [shape: f32[4,1], index: 1, kind: input, shape index: {}]   ;;  %s2820_s2 = inlined_call_operand.hbm [shape: f32[2,4,256], index: 2, kind: input, shape index: {}]   ;;  %s2821_s3 = inlined_call_operand.hbm [shape: f32[2,4,256], index: 3, kind: output, shape index: {}]  }
   0x1   :  { %9 = vsyncpa [#allocation8], 0 }
   0x2   :  { %11 = vsyncpa [#allocation8 + $0x1], 0 }
   0x3   :  { %12 = vsyncpa [#allocation6], 0 }
   0x4   :  { %14 = vsyncpa [#allocation6 + $0x1], 0  ;;  %s2029_s12 = smov 0   ;;  %s2031_s13 = smov 0  }
   0x5   :  { %s2033_s14 = smov 0   ;;  %s2035_s15 = smov 0  }
   0x6 LB: > { %s2050_s16 = sadd.s32 4294967295, %s1953_s15   ;;  %s1637_s17 = sadd.s32 4294967294, %s1953_s15   ;;  %s1953_s15 = sphi %s2035_s15, %s2865_s15   ;;  %s1949_s14 = sphi %s2033_s14, %s2864_s14   ;;  %s1945_s13 = sphi %s2031_s13, %s2863_s13   ;;  %s1941_s12 = sphi %s2029_s12, %s2862_s12  }
   0x7   : > { %p82_p0 = scmp.ne.s32.totalorder %s1945_s13, %s1941_s12  ;;  %p2822_p1 = scmp.eq.s32.totalorder %s2050_s16, 0 }
   0x8   : > { %p112_p3 = scmp.eq.s32.totalorder %s1637_s17, 1  ;;  %p1638_p5 = scmp.ge.s32.totalorder %s1953_s15, 1 }
   0x9   : > { %p2059_p4 = por %p2822_p1, %p82_p0  ;;  %p119_p7 = scmp.lt.s32.totalorder %s1953_s15, 3 }
   0xa   : > { %p2064_p6 = por %p112_p3, %p82_p0  ;;  %s1955_s21 = smov [#allocation4]  }
   0xb   : > { %s2835_s18 = scalar_select %p2059_p4, 1, 0 }
   0xc   : > { %s2836_s19 = scalar_select %p2064_p6, 1, 0 }
   0xd   : > { %p2069_p8 = pnand %p1638_p5, %p119_p7  ;;  %s132_s22 = sshll.u32 %s1955_s21, 4  ;;  %s133_s22 = int_to_ptr.vmem [resolvable:$true] %s132_s22 }
   0xe   : > { %s2077_s23 = sadd.s32 1, %s1953_s15   ;;  %s69_s27 = sadd.s32 1, %s1949_s14 }
   0xf   : > { %s2837_s20 = scalar_select %p2069_p8, 1, 0 }
  0x10   : > { %p1714_p10 = pneg %p2069_p8  ;;  %s66_s25 = ssub.s32 %s1953_s15, %s2077_s23 }
  0x11   : > { %p2087_p12 = scmp.eq.s32.totalorder %s66_s25, 0  ;;  %s1825_s30 = scalar_lea.hbm %s2818_s0, 128 }
  0x12   : > { %p2081_p11 = pnand %p1714_p10, %p2822_p1  ;;  %p1826_p0 = scmp.ne.s32.totalorder %s2818_s0, %s1825_s30 }
  0x13   : > { %s2839_s26 = scalar_select %p2087_p12, 1, 0 }
  0x14   : > { %p1827_p3 = pneg %p2081_p11  ;;  %p1832_p10 = scmp.lt.u32.totalorder %s1825_s30, %s2818_s0 }
  0x16   : > { %p1828_p5 = pnand %p1827_p3, %p1826_p0 }
  0x18   : > { %p1829_p7 = pneg %p1828_p5 }
  0x1a   : > { %p1834_p9 = pnand %p1832_p10, %p1829_p7 }
  0x1c   : > { %1837 = shalt.err (!%p1834_p9)
}
  0x1d   : > { %s1838_s8 = scalar_lea.vmem %s133_s22, 128  ;;  %p1846_p6 = scmp.lt.s32.totalorder %s133_s22, %s133_s22 }
  0x1e   : > { %p1839_p1 = scmp.ne.s32.totalorder %s133_s22, %s1838_s8  ;;  %p1847_p4 = scmp.lt.s32.totalorder %s1838_s8, %s1838_s8 }
  0x20   : > { %p1841_p2 = pnand %p1839_p1, %p1827_p3  ;;  %p1848_p8 = por %p1847_p4, %p1846_p6 }
  0x22   : > { %p1842_p13 = pneg %p1841_p2 }
  0x24   : > { %p1849_p12 = pnand %p1848_p8, %p1842_p13 }
  0x26   : > { %1852 = shalt.err (!%p1849_p12)
}
  0x27   : > { %1717 = dma.hbm_to_vmem [thread:$0]  (!%p2081_p11), %s2818_s0, 128, %s133_s22, [#allocation5]  }
  0x28   : > { %p2840_p1 = scmp.ne.s32.totalorder %s2839_s26, 0  ;;  %p77_p2 = scmp.eq.s32.totalorder %s1953_s15, 0 }
  0x29   : > { %p2841_p4 = scmp.ne.s32.totalorder %s1949_s14, %s1945_s13  ;;  %p2842_p6 = scmp.eq.s32.totalorder %s2050_s16, 1 }
  0x2a   : > { %s2113_s11 = scalar_select %p2840_p1, %s1949_s14, %s69_s27  }
  0x2b   : > { %p2121_p8 = por %p2842_p6, %p2841_p4  ;;  %p1727_p9 = scmp.lt.s32.totalorder %s1953_s15, 2 }
  0x2c   : > { %s146_s21 = sand.u32 1, %s1949_s14   ;;  %p2844_p12 = pmov %p2841_p4 }
  0x2d   : > { %s1641_s24 = sshll.u32 %s146_s21, 3  ;;  %s1656_s25 = sshll.u32 %s1953_s15, 7 }
  0x2e   : > { %p78_p13 = por %p77_p2, %p2844_p12  ;;  %s2134_s22 = scalar_lea.hbm %s2820_s2, %s1656_s25 }
  0x2f   : > { %s150_s26 = scalar_lea.vmem [#allocation7], %s1641_s24  ;;  %s147_s4 = scalar_lea.sflag [#allocation8], %s146_s21 }
  0x30   : > { %s158_s27 = sshll.u32 %s150_s26, 4  ;;  %p2136_p11 = pnand %p1727_p9, %p78_p13  ;;  %s2140_s27 = int_to_ptr.vmem [resolvable:$true] %s158_s27 }
  0x31   : > { %s1853_s5 = scalar_lea.hbm %s2134_s22, 128  ;;  %s1858_s8 = scalar_lea.hbm %s2820_s2, 256 }
  0x32   : > { %p1854_p0 = scmp.ne.s32.totalorder %s2134_s22, %s1853_s5  ;;  %p1855_p3 = pneg %p2136_p11 }
  0x33   : > { %p1859_p10 = scmp.lt.u32.totalorder %s2134_s22, %s2820_s2  ;;  %p1860_p1 = scmp.lt.u32.totalorder %s1858_s8, %s1853_s5 }
  0x34   : > { %p1856_p5 = pnand %p1855_p3, %p1854_p0  ;;  %p1862_p4 = scmp.lt.u32.totalorder %s1853_s5, %s2134_s22 }
  0x35   : > { %p1861_p2 = por %p1860_p1, %p1859_p10 }
  0x36   : > { %p1857_p7 = pneg %p1856_p5 }
  0x37   : > { %p1863_p6 = por %p1862_p4, %p1861_p2 }
  0x39   : > { %p1864_p9 = pnand %p1863_p6, %p1857_p7 }
  0x3b   : > { %1867 = shalt.err (!%p1864_p9)
}
  0x3c   : > { %s1868_s21 = scalar_lea.vmem %s2140_s27, 128  ;;  %s1956_s24 = smov [#allocation7]  }
  0x3d   : > { %p1869_p12 = scmp.ne.s32.totalorder %s2140_s27, %s1868_s21  ;;  %s1873_s25 = sshll.u32 %s1956_s24, 4  ;;  %s1874_s25 = int_to_ptr.vmem [resolvable:$false] %s1873_s25 }
  0x3e   : > { %s1875_s28 = scalar_lea.vmem %s1874_s25, 256  ;;  %p1876_p5 = scmp.lt.s32.totalorder %s2140_s27, %s1874_s25 }
  0x3f   : > { %p1871_p13 = pnand %p1869_p12, %p1855_p3  ;;  %p1877_p10 = scmp.lt.s32.totalorder %s1875_s28, %s1868_s21 }
  0x41   : > { %p1872_p0 = pneg %p1871_p13  ;;  %p1878_p1 = por %p1877_p10, %p1876_p5 }
  0x43   : > { %p1879_p2 = pnand %p1878_p1, %p1872_p0 }
  0x45   : > { %1882 = shalt.err (!%p1879_p2)
}
  0x46   : > { %1721 = dma.hbm_to_vmem [thread:$0]  (!%p2136_p11), %s2134_s22, 128, %s2140_s27, %s147_s4  }
  0x47   : > { %p2846_p7 = scmp.ne.s32.totalorder %s2837_s20, 0 }
  0x48   : > { %p2847_p3 = scmp.eq.s32.totalorder (!%p2846_p7), %s2050_s16, 0 }
  0x49   : > { %167 = sbr.rel (%p2846_p7) target bundleno = 854 (0x356), region = 32 }
  0x50   : > { %1928 = dma.done.wait (%p2847_p3), [#allocation5], 128   ;;  %p2848_p4 = pmov %p2847_p3 }
  0x51   : > { %s2174_s29 = sand.u32 1, %s1945_s13   ;;  %p2849_p11 = scmp.ne.s32.totalorder %s2835_s18, 0 }
  0x52   : > { %1930 = vsyncadd (%p2848_p4), [#allocation5], 4294967168  ;;  %s2825_s26 = sshll.u32 %s2174_s29, 3  ;;  %s174_s30 = scalar_lea.sflag [#allocation8], %s2174_s29 }
  0x53   : > { %s177_s22 = scalar_lea.vmem [#allocation7], %s2825_s26 }
  0x54   : > { %1932 = dma.done.wait (%p2849_p11), %s174_s30, 128  }
  0x55   : > { %1934 = vsyncadd (%p2849_p11), %s174_s30, 4294967168  ;;  %vm201_vm0 = vcmask 830464   ;;  %v1957_v0 = vmov 0.0   ;;  %v203_v1 = vld [vmem:[%s177_s22] sm:$0xff]  ;;  %s1958_s20 = smov 51   ;;  %vm212_vm1 = vcmask 1043864   ;;  %v218_v2 = vlaneseq }
  0x56   : > { %200 = vst [vmem:[#allocation2] sm:$0xff] %v1957_v0  ;;  %202 = vst.msk [vmem:[#allocation2 + $0x8] sm:$0xf] %vm201_vm0, %v1957_v0  ;;  %205 = vrot.lane.b32.xlu0 %v203_v1, %s1958_s20  ;;  %vm213_vm2 = vcmask 1047556   ;;  %vm208_vm3 = vcmask 416768   ;;  %vm216_vm4 = vcmask 412672  }
  0x57   : > { %vm214_vm5 = vmor %vm213_vm2, %vm212_vm1  ;;  %v219_v6 = vand.u32 127, %v218_v2  ;;  %s1959_s18 = smov 109   ;;  %s1960_s27 = smov 127   ;;  %vm320_vm8 = vcmask 1039360   ;;  %vm350_vm12 = vcmask 1031168   ;;  %vm417_vm13 = vcmask 1006592  }
  0x58   : > { %s2826_s4 = smov 94   ;;  %s1962_s5 = smov 126   ;;  %vm371_vm1 = vcmask 1022976   ;;  %vm467_vm2 = vcmask 916480  }
  0x59   : > { %v220_v7 = vadd.s32 128, %v219_v6  ;;  %v2184_v8 = vand.u32 15, %v219_v6  ;;  %s2832_s6 = smov 92   ;;  %s1964_s7 = smov 123  }
  0x5a   : > { %s1965_s8 = smov 112   ;;  %s1966_s9 = smov 124  }
  0x5b   : > { %v2188_v11 = vand.u32 15, %v220_v7  ;;  %v2191_v12 = vadd.s32 4294967293, %v2184_v8  ;;  %s1967_s10 = smov 122   ;;  %s1968_s21 = smov 110  }
  0x5c   : > { %s1969_s24 = smov 108   ;;  %s1970_s25 = smov 111  }
  0x5d   : > { %v2198_v16 = vadd.s32 4294967293, %v2188_v11  ;;  %vm2834_vm6 = vcmp.ge.s32.totalorder %v2191_v12, 0  ;;  %s2828_s28 = smov 106   ;;  %s2829_s30 = smov 107  }
  0x5e   : > { %s1973_s22 = smov 95   ;;  %s1974_s20 = smov 91  }
  0x5f   : > { %vm248_vm7 = vcmp.ge.s32.totalorder %v2198_v16, 0  ;;  %s2830_s26 = smov 93  }
  0xc8   : > { %v206_v3 = vpop.permute.xlu0 %205 }
  0xc9   : > { %v207_v4 = vrot.slane %v206_v3, 4 }
  0xcb   : > { %v209_v5 = vsel %vm208_vm3, %v207_v4, %v206_v3  ;;  %217 = vst.msk [vmem:[#allocation2 + $0x8] sm:$0xf] %vm216_vm4, %v207_v4  ;;  %vm393_vm3 = vcmask 1014784  }
  0xcc   : > { %215 = vst.msk [vmem:[#allocation2] sm:$0xff] %vm214_vm5, %v209_v5 }
  0xd2   : > { %v529_v9 = vld [vmem:[#allocation2 + $0x8] sm:$0xf] }
  0xd3   : > { %v306_v10 = vld [vmem:[#allocation2 + $0x8] sm:$0xf]  ;;  %537 = vrot.lane.b32.xlu0 %v529_v9, %s1959_s18  ;;  %v2195_v15 = vld [vmem:[#allocation2] sm:$0xff] }
  0xd4   : > { %318 = vrot.lane.b32.xlu1 %v306_v10, %s1960_s27  ;;  %v665_v13 = vld [vmem:[#allocation2 + $0x8] sm:$0xf]  ;;  %v2203_v19 = vcombine.high %v2195_v15, %v2195_v15  ;;  %v301_v20 = vsel %vm2834_vm6, %v2195_v15, 0.0  ;;  %v2311_v41 = vcombine.low %v2195_v15, %v2195_v15 }
  0xd5   : > { %v336_v14 = vld [vmem:[#allocation2 + $0x8] sm:$0xf]  ;;  %303 = vst [vmem:[#allocation3] sm:$0xf] %v301_v20 }
  0xd6   : > { %v704_v17 = vld [vmem:[#allocation2 + $0x8] sm:$0xf]  ;;  %v302_v22 = vsel %vm248_vm7, %v2203_v19, 0.0 }
  0xd7   : > { %673 = vrot.lane.b32.xlu0 %v665_v13, %s2826_s4  ;;  %v403_v18 = vld [vmem:[#allocation2 + $0x8] sm:$0xf]  ;;  %304 = vst [vmem:[#allocation3 + $0x8] sm:$0xf] %v302_v22  ;;  %s1976_s4 = smov 96   ;;  %v2409_v22 = vadd.s32 4294967295, %v2184_v8 }
  0xd8   : > { %348 = vrot.lane.b32.xlu1 %v336_v14, %s1962_s5  ;;  %v457_v21 = vld [vmem:[#allocation2 + $0x8] sm:$0xf] }
  0xd9   : > { %v379_v23 = vld [vmem:[#allocation2 + $0x8] sm:$0xf]  ;;  %vm263_vm10 = vcmp.ge.s32.totalorder %v2409_v22, 0 }
  0xda   : > { %v433_v24 = vld [vmem:[#allocation2 + $0x8] sm:$0xf] }
  0xdb   : > { %712 = vrot.lane.b32.xlu0 %v704_v17, %s2832_s6  ;;  %v503_v25 = vld [vmem:[#allocation2 + $0x8] sm:$0xf] }
  0xdc   : > { %415 = vrot.lane.b32.xlu1 %v403_v18, %s1964_s7  ;;  %v547_v26 = vld [vmem:[#allocation2 + $0x8] sm:$0xf]  ;;  %v2400_v18 = vadd.s32 4294967294, %v2188_v11 }
  0xdd   : > { %v483_v27 = vld [vmem:[#allocation2 + $0x8] sm:$0xf] }
  0xde   : > { %v593_v28 = vld [vmem:[#allocation2 + $0x8] sm:$0xf]  ;;  %vm256_vm9 = vcmp.ge.s32.totalorder %v2400_v18, 0 }
  0xdf   : > { %344 = vrot.lane.b32.xlu0 %v2195_v15, %s1962_s5  ;;  %v639_v29 = vld [vmem:[#allocation2 + $0x8] sm:$0xf] }
  0xe0   : > { %465 = vrot.lane.b32.xlu1 %v457_v21, %s1965_s8  ;;  %v573_v30 = vld [vmem:[#allocation2 + $0x8] sm:$0xf] }
  0xe1   : > { %v619_v31 = vld [vmem:[#allocation2 + $0x8] sm:$0xf] }
  0xe2   : > { %v724_v32 = vld [vmem:[#allocation2 + $0x8] sm:$0xf] }
  0xe3   : > { %411 = vrot.lane.b32.xlu0 %v2195_v15, %s1964_s7  ;;  %v770_v33 = vld [vmem:[#allocation2 + $0x8] sm:$0xf] }
  0xe4   : > { %391 = vrot.lane.b32.xlu1 %v379_v23, %s1966_s9  ;;  %v1818_v34 = vld [vmem:[#allocation2 + $0x8] ss:$0 sps:$4 sm:$0xff]   ;;  %v2412_v23 = vadd.s32 4294967295, %v2188_v11 }
  0xe5   : > { %v816_v35 = vld [vmem:[#allocation2 + $0x8] sm:$0xf] }
  0xe6   : > { %v750_v36 = vld [vmem:[#allocation2 + $0x8] sm:$0xf]  ;;  %vm264_vm11 = vcmp.ge.s32.totalorder %v2412_v23, 0 }
  0xe7   : > { %387 = vrot.lane.b32.xlu0 %v2195_v15, %s1966_s9  ;;  %v796_v37 = vld [vmem:[#allocation2 + $0x8] sm:$0xf] }
  0xe8   : > { %445 = vrot.lane.b32.xlu1 %v433_v24, %s1967_s10  ;;  %v1819_v40 = vld [vmem:[#allocation2 + $0x8] ss:$0 sps:$4 sm:$0xff]  }
  0xe9   : > { %v860_v54 = vld [vmem:[#allocation2 + $0x8] sm:$0xf] }
  0xea   : > { %v906_v57 = vld [vmem:[#allocation2 + $0x8] sm:$0xf] }
  0xeb   : > { %507 = vrot.lane.b32.xlu0 %v2195_v15, %s1968_s21  ;;  %v886_v62 = vld [vmem:[#allocation2 + $0x8] sm:$0xf] }
  0xec   : > { %511 = vrot.lane.b32.xlu1 %v503_v25, %s1968_s21  ;;  %v842_v1 = vld [vmem:[#allocation2 + $0x8] sm:$0xf] }
  0xed   : > { %v952_v6 = vld [vmem:[#allocation2 + $0x8] sm:$0xf] }
  0xee   : > { %v932_v10 = vld [vmem:[#allocation2 + $0x8] sm:$0xf] }
  0xef   : > { %487 = vrot.lane.b32.xlu0 %v2195_v15, %s1970_s25  ;;  %v978_v17 = vld [vmem:[#allocation2 + $0x8] sm:$0xf] }
  0xf0   : > { %555 = vrot.lane.b32.xlu1 %v547_v26, %s1969_s24  ;;  %v1820_v26 = vld [vmem:[#allocation2 + $0x8] ss:$0 sps:$4 sm:$0xff]  }
  0xf3   : > { %597 = vrot.lane.b32.xlu0 %v2195_v15, %s2828_s28 }
  0xf4   : > { %491 = vrot.lane.b32.xlu1 %v483_v27, %s1970_s25 }
  0xf7   : > { %577 = vrot.lane.b32.xlu0 %v2195_v15, %s2829_s30 }
  0xf8   : > { %601 = vrot.lane.b32.xlu1 %v593_v28, %s2828_s28  ;;  %s2833_s28 = smov 80  }
  0xfb   : > { %728 = vrot.lane.b32.xlu0 %v2195_v15, %s1974_s20 }
  0xfc   : > { %647 = vrot.lane.b32.xlu1 %v639_v29, %s1973_s22 }
  0xff   : > { %692 = vrot.lane.b32.xlu0 %v2195_v15, %s2830_s26  ;;  %s1979_s26 = smov 78  }
 0x100   : > { %581 = vrot.lane.b32.xlu1 %v573_v30, %s2829_s30  ;;  %s1978_s30 = smov 90   ;;  %v2425_v30 = vadd.s32 4294967294, %v2184_v8 }
 0x102   : > { %vm255_vm14 = vcmp.ge.s32.totalorder %v2425_v30, 0 }
 0x103   : > { %708 = vrot.lane.b32.xlu0 %v2195_v15, %s2832_s6  ;;  %s1980_s6 = smov 125  }
 0x104   : > { %627 = vrot.lane.b32.xlu1 %v619_v31, %s1976_s4  ;;  %v2428_v31 = vadd.s32 2, %v2184_v8 }
 0x106   : > { %vm281_vm15 = vcmp.lt.s32.totalorder %v2428_v31, 16 }
 0x107   : > { %774 = vrot.lane.b32.xlu0 %v2195_v15, %s2833_s28 }
 0x108   : > { %732 = vrot.lane.b32.xlu1 %v724_v32, %s1974_s20  ;;  %v2431_v32 = vadd.s32 2, %v2188_v11 }
 0x10a   : > { %vm282_vm0 = vcmp.lt.s32.totalorder %v2431_v32, 16 }
 0x10b   : > { %754 = vrot.lane.b32.xlu0 %v2195_v15, %s1978_s30 }
 0x10c   : > { %778 = vrot.lane.b32.xlu1 %v770_v33, %s2833_s28  ;;  %s1981_s28 = smov 79  }
 0x10f   : > { %369 = vrot.lane.b32.xlu0 %v1818_v34, %s1980_s6 }
 0x110   : > { %824 = vrot.lane.b32.xlu1 %v816_v35, %s1979_s26 }
 0x113   : > { %316 = vrot.lane.b32.xlu0 %v2203_v19, %s1960_s27 }
 0x114   : > { %758 = vrot.lane.b32.xlu1 %v750_v36, %s1978_s30 }
 0x117   : > { %346 = vrot.lane.b32.xlu0 %v2203_v19, %s1962_s5  ;;  %s2851_s5 = smov 94  }
 0x118   : > { %804 = vrot.lane.b32.xlu1 %v796_v37, %s1981_s28 }
 0x11b   : > { %413 = vrot.lane.b32.xlu0 %v2203_v19, %s1964_s7  ;;  %s2852_s7 = smov 107  }
 0x11c   : > { %314 = vrot.lane.b32.xlu1 %v2195_v15, %s1960_s27  ;;  %s2850_s27 = smov 106  }
 0x11f   : > { %463 = vrot.lane.b32.xlu0 %v2203_v19, %s1965_s8 }
 0x120   : > { %367 = vrot.lane.b32.xlu1 %v2195_v15, %s1980_s6 }
 0x123   : > { %389 = vrot.lane.b32.xlu0 %v2203_v19, %s1966_s9  ;;  %s1984_s9 = smov 75  }
 0x124   : > { %461 = vrot.lane.b32.xlu1 %v2195_v15, %s1965_s8  ;;  %s2853_s8 = smov 93  }
 0x127   : > { %443 = vrot.lane.b32.xlu0 %v2203_v19, %s1967_s10 }
 0x128   : > { %441 = vrot.lane.b32.xlu1 %v2195_v15, %s1967_s10  ;;  %s1985_s10 = smov 77  }
 0x12b   : > { %509 = vrot.lane.b32.xlu0 %v2203_v19, %s1968_s21  ;;  %s1986_s21 = smov 63  }
 0x12c   : > { %551 = vrot.lane.b32.xlu1 %v2195_v15, %s1969_s24 }
 0x12f   : > { %553 = vrot.lane.b32.xlu0 %v2203_v19, %s1969_s24  ;;  %s1987_s24 = smov 64  }
 0x130   : > { %533 = vrot.lane.b32.xlu1 %v2195_v15, %s1959_s18 }
 0x133   : > { %489 = vrot.lane.b32.xlu0 %v2203_v19, %s1970_s25  ;;  %s1988_s25 = smov 62  }
 0x134   : > { %643 = vrot.lane.b32.xlu1 %v2195_v15, %s1973_s22 }
 0x137   : > { %599 = vrot.lane.b32.xlu0 %v2203_v19, %s2850_s27  ;;  %s1993_s27 = smov 58  }
 0x138   : > { %623 = vrot.lane.b32.xlu1 %v2195_v15, %s1976_s4 }
 0x13b   : > { %645 = vrot.lane.b32.xlu0 %v2203_v19, %s1973_s22  ;;  %s1991_s22 = smov 48  }
 0x13c   : > { %669 = vrot.lane.b32.xlu1 %v2195_v15, %s2851_s5 }
 0x13f   : > { %579 = vrot.lane.b32.xlu0 %v2203_v19, %s2852_s7  ;;  %s1995_s7 = smov 44  }
 0x140   : > { %820 = vrot.lane.b32.xlu1 %v2195_v15, %s1979_s26 }
 0x143   : > { %625 = vrot.lane.b32.xlu0 %v2203_v19, %s1976_s4  ;;  %s2854_s4 = smov 80  }
 0x144   : > { %800 = vrot.lane.b32.xlu1 %v2195_v15, %s1981_s28 }
 0x145   : > { %v2302_v38 = vpop.permute.xlu0 %537 }
 0x146   : > { %v2304_v39 = vpop.permute.xlu1 %318 }
 0x147   : > { %730 = vrot.lane.b32.xlu0 %v2203_v19, %s1974_s20  ;;  %s1992_s20 = smov 60  }
 0x148   : > { %694 = vrot.lane.b32.xlu1 %v1819_v40, %s2853_s8 }
 0x149   : > { %v2313_v42 = vpop.permute.xlu0 %673 }
 0x14a   : > { %v2315_v43 = vpop.permute.xlu1 %348 }
 0x14b   : > { %776 = vrot.lane.b32.xlu0 %v2203_v19, %s2854_s4  ;;  %s1997_s4 = smov 45  }
 0x14c   : > { %365 = vrot.lane.b32.xlu1 %v2311_v41, %s1980_s6  ;;  %s2855_s6 = smov 92  }
 0x14d   : > { %v2321_v44 = vpop.permute.xlu0 %712 }
 0x14e   : > { %v2323_v45 = vpop.permute.xlu1 %415 }
 0x14f   : > { %822 = vrot.lane.b32.xlu0 %v2203_v19, %s1979_s26  ;;  %s1982_s26 = smov 76  }
 0x150   : > { %535 = vrot.lane.b32.xlu1 %v2203_v19, %s1959_s18  ;;  %s1983_s18 = smov 74  }
 0x151   : > { %v2331_v47 = vpop.permute.xlu0 %344 }
 0x152   : > { %v2329_v46 = vpop.permute.xlu1 %465 }
 0x153   : > { %756 = vrot.lane.b32.xlu0 %v2203_v19, %s1978_s30  ;;  %s1990_s30 = smov 59  }
 0x154   : > { %671 = vrot.lane.b32.xlu1 %v2203_v19, %s2851_s5  ;;  %s1994_s5 = smov 46  }
 0x155   : > { %v2339_v49 = vpop.permute.xlu0 %411 }
 0x156   : > { %v2337_v48 = vpop.permute.xlu1 %391 }
 0x157   : > { %802 = vrot.lane.b32.xlu0 %v2203_v19, %s1981_s28  ;;  %s1989_s28 = smov 61  }
 0x158   : > { %710 = vrot.lane.b32.xlu1 %v2203_v19, %s2855_s6  ;;  %s1998_s6 = smov 42  }
 0x159   : > { %v2347_v51 = vpop.permute.xlu0 %387 }
 0x15a   : > { %v2345_v50 = vpop.permute.xlu1 %445 }
 0x15b   : > { %866 = vrot.lane.b32.xlu0 %v2203_v19, %s1982_s26 }
 0x15c   : > { %690 = vrot.lane.b32.xlu1 %v2311_v41, %s2853_s8  ;;  %s1996_s8 = smov 47  }
 0x15d   : > { %v2354_v53 = vpop.permute.xlu0 %507 }
 0x15e   : > { %v2352_v52 = vpop.permute.xlu1 %511 }
 0x15f   : > { %912 = vrot.lane.b32.xlu0 %v2203_v19, %s1983_s18 }
 0x160   : > { %868 = vrot.lane.b32.xlu1 %v860_v54, %s1982_s26 }
 0x161   : > { %v2359_v56 = vpop.permute.xlu0 %487 }
 0x162   : > { %v2357_v55 = vpop.permute.xlu1 %555 }
 0x163   : > { %864 = vrot.lane.b32.xlu0 %v2195_v15, %s1982_s26  ;;  %s1999_s26 = smov 31  }
 0x164   : > { %914 = vrot.lane.b32.xlu1 %v906_v57, %s1983_s18  ;;  %v1037_v57 = vld [vmem:[#allocation2 + $0x8] sm:$0xf] }
 0x165   : > { %v2364_v59 = vpop.permute.xlu0 %597 }
 0x166   : > { %v2362_v58 = vpop.permute.xlu1 %491 }
 0x167   : > { %892 = vrot.lane.b32.xlu0 %v2203_v19, %s1984_s9 }
 0x168   : > { %910 = vrot.lane.b32.xlu1 %v2195_v15, %s1983_s18  ;;  %s2000_s18 = smov 43  }
 0x169   : > { %v2370_v61 = vpop.permute.xlu0 %577 }
 0x16a   : > { %v2368_v60 = vpop.permute.xlu1 %601 }
 0x16b   : > { %848 = vrot.lane.b32.xlu0 %v2203_v19, %s1985_s10 }
 0x16c   : > { %894 = vrot.lane.b32.xlu1 %v886_v62, %s1984_s9 }
 0x16d   : > { %v2375_v0 = vpop.permute.xlu0 %728 }
 0x16e   : > { %v2373_v63 = vpop.permute.xlu1 %647 }
 0x16f   : > { %890 = vrot.lane.b32.xlu0 %v2195_v15, %s1984_s9  ;;  %s2001_s9 = smov 32  }
 0x170   : > { %850 = vrot.lane.b32.xlu1 %v842_v1, %s1985_s10 }
 0x171   : > { %v2380_v3 = vpop.permute.xlu0 %692 }
 0x172   : > { %v2378_v2 = vpop.permute.xlu1 %581 }
 0x173   : > { %958 = vrot.lane.b32.xlu0 %v2203_v19, %s1986_s21 }
 0x174   : > { %846 = vrot.lane.b32.xlu1 %v2195_v15, %s1985_s10  ;;  %s2002_s10 = smov 27  }
 0x175   : > { %v2386_v5 = vpop.permute.xlu0 %708 }
 0x176   : > { %v2384_v4 = vpop.permute.xlu1 %627 }
 0x177   : > { %956 = vrot.lane.b32.xlu0 %v2195_v15, %s1986_s21 }
 0x178   : > { %960 = vrot.lane.b32.xlu1 %v952_v6, %s1986_s21  ;;  %s2003_s21 = smov 30  }
 0x179   : > { %v2391_v9 = vpop.permute.xlu0 %774 }
 0x17a   : > { %v2389_v7 = vpop.permute.xlu1 %732 }
 0x17b   : > { %940 = vrot.lane.b32.xlu0 %v932_v10, %s1987_s24 }
 0x17c   : > { %938 = vrot.lane.b32.xlu1 %v2203_v19, %s1987_s24 }
 0x17d   : > { %v2396_v14 = vpop.permute.xlu0 %754 }
 0x17e   : > { %v2394_v13 = vpop.permute.xlu1 %778 }
 0x17f   : > { %986 = vrot.lane.b32.xlu0 %v978_v17, %s1988_s25 }
 0x180   : > { %984 = vrot.lane.b32.xlu1 %v2203_v19, %s1988_s25 }
 0x181   : > { %v2404_v21 = vpop.permute.xlu0 %369 }
 0x182   : > { %v2402_v20 = vpop.permute.xlu1 %824 }
 0x183   : > { %982 = vrot.lane.b32.xlu0 %v2195_v15, %s1988_s25  ;;  %s2005_s25 = smov 29  }
 0x184   : > { %936 = vrot.lane.b32.xlu1 %v2195_v15, %s1987_s24  ;;  %s2004_s24 = smov 28  }
 0x185   : > { %v317_v25 = vpop.permute.xlu0 %316 }
 0x186   : > { %v2415_v24 = vpop.permute.xlu1 %758  ;;  %v322_v27 = vsel %vm320_vm8, %v317_v25, %v2304_v39 }
 0x187   : > { %v326_v28 = vsel %vm256_vm9, %v322_v27, 0.0  ;;  %1007 = vrot.lane.b32.xlu0 %v1820_v26, %s1989_s28 }
 0x188   : > { %1005 = vrot.lane.b32.xlu1 %v2195_v15, %s1989_s28  ;;  %v330_v29 = vrot.slane %v326_v28, 4 }
 0x189   : > { %v347_v34 = vpop.permute.xlu0 %346 }
 0x18a   : > { %v2433_v33 = vpop.permute.xlu1 %804  ;;  %334 = vst [vmem:[#allocation3 + $0x8] sm:$0xf0] %v330_v29  ;;  %v351_v35 = vsel %vm350_vm12, %v2331_v47, %v347_v34  ;;  %v352_v36 = vsel %vm350_vm12, %v347_v34, %v2315_v43  ;;  %v1083_v34 = vld [vmem:[#allocation2 + $0x8] sm:$0xf] }
 0x18b   : > { %v355_v37 = vsel %vm263_vm10, %v351_v35, 0.0  ;;  %v356_v39 = vsel %vm264_vm11, %v352_v36, 0.0  ;;  %1043 = vrot.lane.b32.xlu0 %v2203_v19, %s1990_s30  ;;  %v2478_v36 = vadd.s32 3, %v2184_v8 }
 0x18c   : > { %1003 = vrot.lane.b32.xlu1 %v2311_v41, %s1989_s28  ;;  %357 = vst [vmem:[#allocation3 + $0x10] sm:$0xf] %v355_v37  ;;  %358 = vst [vmem:[#allocation3 + $0x18] sm:$0xf] %v356_v39  ;;  %s2006_s28 = smov 26  }
 0x18d   : > { %v414_v43 = vpop.permute.xlu0 %413  ;;  %vm289_vm12 = vcmp.lt.s32.totalorder %v2478_v36, 16 }
 0x18e   : > { %v315_v40 = vpop.permute.xlu1 %314  ;;  %v418_v41 = vsel %vm417_vm13, %v2339_v49, %v414_v43  ;;  %v419_v54 = vsel %vm417_vm13, %v414_v43, %v2323_v45  ;;  %v2460_v49 = vadd.s32 1, %v2184_v8 }
 0x18f   : > { %v321_v47 = vsel %vm320_vm8, %v315_v40, %v317_v25  ;;  %v422_v1 = vsel %vm281_vm15, %v418_v41, 0.0  ;;  %v423_v6 = vsel %vm282_vm0, %v419_v54, 0.0  ;;  %1089 = vrot.lane.b32.xlu0 %v2203_v19, %s1991_s22  ;;  %v2463_v25 = vadd.s32 1, %v2188_v11 }
 0x190   : > { %v325_v62 = vsel %vm255_vm14, %v321_v47, 0.0  ;;  %1045 = vrot.lane.b32.xlu1 %v1037_v57, %s1990_s30  ;;  %v426_v10 = vrot.slane %v422_v1, 4  ;;  %v427_v17 = vrot.slane %v423_v6, 4  ;;  %vm273_vm4 = vcmp.lt.s32.totalorder %v2460_v49, 16  ;;  %v1017_v1 = vld [vmem:[#allocation2 + $0x8] sm:$0xf] }
 0x191   : > { %v329_v45 = vrot.slane %v325_v62, 4  ;;  %v464_v27 = vpop.permute.xlu0 %463  ;;  %vm274_vm5 = vcmp.lt.s32.totalorder %v2463_v25, 16  ;;  %vm447_vm8 = vcmask 998400   ;;  %v1397_v6 = vld [vmem:[#allocation3 + $0x8] sm:$0xff] }
 0x192   : > { %v2465_v26 = vpop.permute.xlu1 %367  ;;  %430 = vst [vmem:[#allocation3 + $0x20] sm:$0xf0] %v426_v10  ;;  %431 = vst [vmem:[#allocation3 + $0x28] sm:$0xf0] %v427_v17  ;;  %v469_v29 = vsel %vm467_vm2, %v464_v27, %v2329_v46  ;;  %v2483_v46 = vadd.s32 3, %v2188_v11 }
 0x193   : > { %333 = vst [vmem:[#allocation3] sm:$0xf0] %v329_v45  ;;  %v373_v28 = vsel %vm371_vm1, %v2465_v26, %v2404_v21  ;;  %v473_v35 = vsel %vm248_vm7, %v469_v29, 0.0  ;;  %1041 = vrot.lane.b32.xlu0 %v2195_v15, %s1990_s30 }
 0x194   : > { %377 = vst [vmem:[#allocation3 + $0x18] sm:$0xf0] %v373_v28  ;;  %1091 = vrot.lane.b32.xlu1 %v1083_v34, %s1991_s22  ;;  %v477_v37 = vrot.slane %v473_v35, 4  ;;  %vm290_vm13 = vcmp.lt.s32.totalorder %v2483_v46, 16  ;;  %v1063_v35 = vld [vmem:[#allocation2 + $0x8] sm:$0xf] }
 0x195   : > { %v390_v39 = vpop.permute.xlu0 %389 }
 0x196   : > { %v462_v21 = vpop.permute.xlu1 %461  ;;  %481 = vst [vmem:[#allocation3 + $0x38] sm:$0xf0] %v477_v37  ;;  %v394_v43 = vsel %vm393_vm3, %v2347_v51, %v390_v39  ;;  %v395_v47 = vsel %vm393_vm3, %v390_v39, %v2337_v48  ;;  %vm557_vm3 = vcmask 883712  }
 0x197   : > { %v468_v40 = vsel %vm467_vm2, %v462_v21, %v464_v27  ;;  %v398_v41 = vsel %vm273_vm4, %v394_v43, 0.0  ;;  %v399_v54 = vsel %vm274_vm5, %v395_v47, 0.0  ;;  %1023 = vrot.lane.b32.xlu0 %v2203_v19, %s1992_s20  ;;  %vm513_vm2 = vcmask 900096  }
 0x198   : > { %v472_v8 = vsel %vm2834_vm6, %v468_v40, 0.0  ;;  %1087 = vrot.lane.b32.xlu1 %v2195_v15, %s1991_s22  ;;  %400 = vst [vmem:[#allocation3 + $0x20] sm:$0xf] %v398_v41  ;;  %401 = vst [vmem:[#allocation3 + $0x28] sm:$0xf] %v399_v54 }
 0x199   : > { %v476_v11 = vrot.slane %v472_v8, 4  ;;  %v444_v51 = vpop.permute.xlu0 %443 }
 0x19a   : > { %v442_v48 = vpop.permute.xlu1 %441  ;;  %v449_v62 = vsel %vm447_vm8, %v444_v51, %v2345_v50 }
 0x19b   : > { %480 = vst [vmem:[#allocation3 + $0x30] sm:$0xf0] %v476_v11  ;;  %v448_v57 = vsel %vm447_vm8, %v442_v48, %v444_v51  ;;  %v1399_v45 = vld [vmem:[#allocation3 + $0x18] sm:$0xff]  ;;  %v453_v17 = vsel %vm290_vm13, %v449_v62, 0.0  ;;  %1069 = vrot.lane.b32.xlu0 %v2203_v19, %s1993_s27  ;;  %vm493_vm8 = vcmask 908288  }
 0x19c   : > { %v452_v10 = vsel %vm289_vm12, %v448_v57, 0.0  ;;  %1025 = vrot.lane.b32.xlu1 %v1017_v1, %s1992_s20  ;;  %v1658_v27 = vpack.c.bf16 %v1399_v45, %v1397_v6  ;;  %455 = vst [vmem:[#allocation3 + $0x38] sm:$0xf] %v453_v17  ;;  %v1129_v62 = vld [vmem:[#allocation2 + $0x8] sm:$0xf] }
 0x19d   : > { %454 = vst [vmem:[#allocation3 + $0x30] sm:$0xf] %v452_v10  ;;  %v510_v50 = vpop.permute.xlu0 %509  ;;  %v1173_v17 = vld [vmem:[#allocation2 + $0x8] sm:$0xf] }
 0x19e   : > { %v552_v28 = vpop.permute.xlu1 %551  ;;  %1659 = vmatprep.subr.bf16.mxu0 %v1658_v27  ;;  %v514_v29 = vsel %vm513_vm2, %v2354_v53, %v510_v50  ;;  %v515_v34 = vsel %vm513_vm2, %v510_v50, %v2352_v52  ;;  %vm603_vm2 = vcmask 867328  }
 0x19f   : > { %v518_v37 = vsel %vm263_vm10, %v514_v29, 0.0  ;;  %v519_v21 = vsel %vm264_vm11, %v515_v34, 0.0  ;;  %1021 = vrot.lane.b32.xlu0 %v2195_v15, %s1992_s20  ;;  %s1657_s20 = sshll.u32 %s2050_s16, 7  ;;  %s2008_s16 = smov [#allocation9]  }
 0x1a0   : > { %1071 = vrot.lane.b32.xlu1 %v1063_v35, %s1993_s27  ;;  %v522_v39 = vrot.slane %v518_v37, 4  ;;  %v523_v40 = vrot.slane %v519_v21, 4 }
 0x1a1   : > { %v554_v47 = vpop.permute.xlu0 %553 }
 0x1a2   : > { %v2515_v43 = vpop.permute.xlu1 %533  ;;  %526 = vst [vmem:[#allocation3 + $0x40] sm:$0xf0] %v522_v39  ;;  %527 = vst [vmem:[#allocation3 + $0x48] sm:$0xf0] %v523_v40  ;;  %v558_v52 = vsel %vm557_vm3, %v552_v28, %v554_v47  ;;  %v559_v53 = vsel %vm557_vm3, %v554_v47, %v2357_v55  ;;  %vm649_vm3 = vcmask 777216  }
 0x1a3   : > { %v562_v8 = vsel %vm273_vm4, %v558_v52, 0.0  ;;  %v563_v41 = vsel %vm274_vm5, %v559_v53, 0.0  ;;  %1135 = vrot.lane.b32.xlu0 %v2203_v19, %s1994_s5 }
 0x1a4   : > { %1067 = vrot.lane.b32.xlu1 %v2195_v15, %s1993_s27  ;;  %v566_v54 = vrot.slane %v562_v8, 4  ;;  %v567_v11 = vrot.slane %v563_v41, 4  ;;  %v1109_v8 = vld [vmem:[#allocation2 + $0x8] sm:$0xf]  ;;  %s2859_s27 = sshll.u32 %s2174_s29, 3 }
 0x1a5   : > { %v490_v51 = vpop.permute.xlu0 %489 }
 0x1a6   : > { %v644_v48 = vpop.permute.xlu1 %643  ;;  %570 = vst [vmem:[#allocation3 + $0x50] sm:$0xf0] %v566_v54  ;;  %571 = vst [vmem:[#allocation3 + $0x58] sm:$0xf0] %v567_v11  ;;  %v494_v55 = vsel %vm493_vm8, %v2359_v56, %v490_v51  ;;  %v495_v57 = vsel %vm493_vm8, %v490_v51, %v2362_v58  ;;  %vm583_vm8 = vcmask 875520  }
 0x1a7   : > { %v498_v1 = vsel %vm255_vm14, %v494_v55, 0.0  ;;  %v499_v6 = vsel %vm256_vm9, %v495_v57, 0.0  ;;  %1179 = vrot.lane.b32.xlu0 %v2203_v19, %s1995_s7 }
 0x1a8   : > { %1137 = vrot.lane.b32.xlu1 %v1129_v62, %s1994_s5  ;;  %500 = vst [vmem:[#allocation3 + $0x40] sm:$0xf] %v498_v1  ;;  %501 = vst [vmem:[#allocation3 + $0x48] sm:$0xf] %v499_v6 }
 0x1a9   : > { %v600_v10 = vpop.permute.xlu0 %599 }
 0x1aa   : > { %v624_v45 = vpop.permute.xlu1 %623  ;;  %v604_v56 = vsel %vm603_vm2, %v2364_v59, %v600_v10  ;;  %v605_v58 = vsel %vm603_vm2, %v600_v10, %v2368_v60  ;;  %vm629_vm2 = vcmask 785408  }
 0x1ab   : > { %v608_v27 = vsel %vm289_vm12, %v604_v56, 0.0  ;;  %v609_v28 = vsel %vm290_vm13, %v605_v58, 0.0  ;;  %1133 = vrot.lane.b32.xlu0 %v2195_v15, %s1994_s5  ;;  %s199_s5 = scalar_lea.vmem [#allocation9], %s2859_s27 }
 0x1ac   : > { %1181 = vrot.lane.b32.xlu1 %v1173_v17, %s1995_s7  ;;  %v612_v50 = vrot.slane %v608_v27, 4  ;;  %v613_v29 = vrot.slane %v609_v28, 4 }
 0x1ad   : > { %v646_v35 = vpop.permute.xlu0 %645 }
 0x1ae   : > { %v2538_v34 = vpop.permute.xlu1 %669  ;;  %616 = vst [vmem:[#allocation3 + $0x60] sm:$0xf0] %v612_v50  ;;  %617 = vst [vmem:[#allocation3 + $0x68] sm:$0xf0] %v613_v29  ;;  %v650_v59 = vsel %vm649_vm3, %v644_v48, %v646_v35  ;;  %v651_v60 = vsel %vm649_vm3, %v646_v35, %v2373_v63  ;;  %vm696_vm3 = vcmask 760832  }
 0x1af   : > { %v654_v37 = vsel %vm255_vm14, %v650_v59, 0.0  ;;  %v655_v21 = vsel %vm256_vm9, %v651_v60, 0.0  ;;  %1115 = vrot.lane.b32.xlu0 %v2203_v19, %s1996_s8  ;;  %v1219_v29 = vld [vmem:[#allocation2 + $0x8] sm:$0xf] }
 0x1b0   : > { %1177 = vrot.lane.b32.xlu1 %v2195_v15, %s1995_s7  ;;  %v658_v39 = vrot.slane %v654_v37, 4  ;;  %v659_v40 = vrot.slane %v655_v21, 4  ;;  %s1555_s7 = sshll.u32 %s199_s5, 4  ;;  %s2776_s7 = int_to_ptr.vmem [resolvable:$true] %s1555_s7 }
 0x1b1   : > { %v580_v52 = vpop.permute.xlu0 %579 }
 0x1b2   : > { %v2547_v47 = vpop.permute.xlu1 %820  ;;  %662 = vst [vmem:[#allocation3 + $0x70] sm:$0xf0] %v658_v39  ;;  %663 = vst [vmem:[#allocation3 + $0x78] sm:$0xf0] %v659_v40  ;;  %v584_v63 = vsel %vm583_vm8, %v2370_v61, %v580_v52  ;;  %v585_v53 = vsel %vm583_vm8, %v580_v52, %v2378_v2  ;;  %v1155_v2 = vld [vmem:[#allocation2 + $0x8] sm:$0xf] }
 0x1b3   : > { %v588_v41 = vsel %vm281_vm15, %v584_v63, 0.0  ;;  %v589_v54 = vsel %vm282_vm0, %v585_v53, 0.0  ;;  %1113 = vrot.lane.b32.xlu0 %v2195_v15, %s1996_s8  ;;  %vm734_vm8 = vcmask 744448   ;;  %v1265_v52 = vld [vmem:[#allocation2 + $0x8] sm:$0xf]  ;;  %v2590_v63 = vld [vmem:[#allocation2] sm:$0xff] }
 0x1b4   : > { %1117 = vrot.lane.b32.xlu1 %v1109_v8, %s1996_s8  ;;  %590 = vst [vmem:[#allocation3 + $0x60] sm:$0xf] %v588_v41  ;;  %591 = vst [vmem:[#allocation3 + $0x68] sm:$0xf] %v589_v54  ;;  %v2601_v8 = vcombine.high %v2590_v63, %v2590_v63 }
 0x1b5   : > { %v626_v48 = vpop.permute.xlu0 %625 }
 0x1b6   : > { %v2556_v11 = vpop.permute.xlu1 %800  ;;  %v630_v51 = vsel %vm629_vm2, %v624_v45, %v626_v48  ;;  %v631_v61 = vsel %vm629_vm2, %v626_v48, %v2384_v4  ;;  %vm780_vm2 = vcmask 654336  }
 0x1b7   : > { %v634_v55 = vsel %vm2834_vm6, %v630_v51, 0.0  ;;  %v635_v57 = vsel %vm248_vm7, %v631_v61, 0.0  ;;  %1163 = vrot.lane.b32.xlu0 %v1155_v2, %s1997_s4  ;;  %v1403_v2 = vld [vmem:[#allocation3 + $0x38] sm:$0xff] }
 0x1b8   : > { %1161 = vrot.lane.b32.xlu1 %v2203_v19, %s1997_s4  ;;  %636 = vst [vmem:[#allocation3 + $0x70] sm:$0xf] %v634_v55  ;;  %637 = vst [vmem:[#allocation3 + $0x78] sm:$0xf] %v635_v57 }
 0x1b9   : > { %v731_v1 = vpop.permute.xlu0 %730 }
 0x1ba   : > { %v695_v62 = vpop.permute.xlu1 %694  ;;  %v735_v6 = vsel %vm734_vm8, %v2375_v0, %v731_v1  ;;  %v736_v45 = vsel %vm734_vm8, %v731_v1, %v2389_v7  ;;  %vm539_vm8 = vcmask 891904  }
 0x1bb   : > { %v698_v4 = vsel %vm696_vm3, %v2380_v3, %v695_v62  ;;  %v739_v10 = vsel %vm281_vm15, %v735_v6, 0.0  ;;  %v740_v56 = vsel %vm282_vm0, %v736_v45, 0.0  ;;  %1225 = vrot.lane.b32.xlu0 %v2203_v19, %s1998_s6  ;;  %v1402_v45 = vld [vmem:[#allocation3 + $0x30] sm:$0xff] }
 0x1bc   : > { %702 = vst [vmem:[#allocation3 + $0x88] sm:$0xf0] %v698_v4  ;;  %1159 = vrot.lane.b32.xlu1 %v2195_v15, %s1997_s4  ;;  %v743_v58 = vrot.slane %v739_v10, 4  ;;  %v744_v17 = vrot.slane %v740_v56, 4 }
 0x1bd   : > { %v777_v0 = vpop.permute.xlu0 %776 }
 0x1be   : > { %v366_v27 = vpop.permute.xlu1 %365  ;;  %747 = vst [vmem:[#allocation3 + $0x90] sm:$0xf0] %v743_v58  ;;  %748 = vst [vmem:[#allocation3 + $0x98] sm:$0xf0] %v744_v17  ;;  %v781_v28 = vsel %vm780_vm2, %v2391_v9, %v777_v0  ;;  %v782_v50 = vsel %vm780_vm2, %v777_v0, %v2394_v13  ;;  %vm675_vm2 = vcmask 769024  }
 0x1bf   : > { %v372_v7 = vsel %vm371_vm1, %v366_v27, %v2465_v26  ;;  %v785_v35 = vsel %vm2834_vm6, %v781_v28, 0.0  ;;  %v786_v59 = vsel %vm248_vm7, %v782_v50, 0.0  ;;  %1271 = vrot.lane.b32.xlu0 %v2203_v19, %s1999_s26  ;;  %vm826_vm1 = vcmask 637952   ;;  %v1199_v17 = vld [vmem:[#allocation2 + $0x8] sm:$0xf] }
 0x1c0   : > { %376 = vst [vmem:[#allocation3 + $0x10] sm:$0xf0] %v372_v7  ;;  %1227 = vrot.lane.b32.xlu1 %v1219_v29, %s1998_s6  ;;  %v789_v26 = vrot.slane %v785_v35, 4  ;;  %v790_v9 = vrot.slane %v786_v59, 4  ;;  %vm806_vm6 = vcmask 646144  }
 0x1c1   : > { %v823_v13 = vpop.permute.xlu0 %822 }
 0x1c2   : > { %v536_v60 = vpop.permute.xlu1 %535  ;;  %793 = vst [vmem:[#allocation3 + $0xa0] sm:$0xf0] %v789_v26  ;;  %794 = vst [vmem:[#allocation3 + $0xa8] sm:$0xf0] %v790_v9  ;;  %v827_v39 = vsel %vm826_vm1, %v2547_v47, %v823_v13  ;;  %v828_v40 = vsel %vm826_vm1, %v823_v13, %v2402_v20  ;;  %vm714_vm1 = vcmask 752640   ;;  %v1404_v13 = vld [vmem:[#allocation3 + $0x40] sm:$0xff] }
 0x1c3   : > { %v540_v37 = vsel %vm539_vm8, %v2515_v43, %v536_v60  ;;  %v541_v21 = vsel %vm539_vm8, %v536_v60, %v2302_v38  ;;  %v831_v19 = vsel %vm263_vm10, %v827_v39, 0.0  ;;  %v832_v53 = vsel %vm264_vm11, %v828_v40, 0.0  ;;  %1223 = vrot.lane.b32.xlu0 %v2195_v15, %s1998_s6  ;;  %v1245_v9 = vld [vmem:[#allocation2 + $0x8] sm:$0xf]  ;;  %s2774_s6 = scalar_lea.hbm %s2821_s3, %s1657_s20 }
 0x1c4   : > { %544 = vst [vmem:[#allocation3 + $0x50] sm:$0xf] %v540_v37  ;;  %545 = vst [vmem:[#allocation3 + $0x58] sm:$0xf] %v541_v21  ;;  %1273 = vrot.lane.b32.xlu1 %v1265_v52, %s1999_s26  ;;  %vm760_vm8 = vcmask 736256   ;;  %v835_v38 = vrot.slane %v831_v19, 4 }
 0x1c5   : > { %v836_v20 = vrot.slane %v832_v53, 4  ;;  %v757_v47 = vpop.permute.xlu0 %756  ;;  %v1411_v60 = vld [vmem:[#allocation3 + $0x78] sm:$0xff]  ;;  %v1409_v21 = vld [vmem:[#allocation3 + $0x68] sm:$0xff]  ;;  %v1410_v19 = vld [vmem:[#allocation3 + $0x70] sm:$0xff] }
 0x1c6   : > { %v672_v43 = vpop.permute.xlu1 %671  ;;  %839 = vst [vmem:[#allocation3 + $0xb0] sm:$0xf0] %v835_v38  ;;  %v761_v48 = vsel %vm760_vm8, %v2396_v14, %v757_v47  ;;  %v762_v51 = vsel %vm760_vm8, %v757_v47, %v2415_v24  ;;  %v1401_v24 = vld [vmem:[#allocation3 + $0x28] sm:$0xff]  ;;  %v1670_v52 = vpack.c.bf16 %v1411_v60, %v1409_v21  ;;  %v1408_v38 = vld [vmem:[#allocation3 + $0x60] sm:$0xff]  ;;  %vm852_vm8 = vcmask 629760  }
 0x1c7   : > { %840 = vst [vmem:[#allocation3 + $0xb8] sm:$0xf0] %v836_v20  ;;  %v676_v41 = vsel %vm675_vm2, %v2538_v34, %v672_v43  ;;  %v677_v54 = vsel %vm675_vm2, %v672_v43, %v2313_v42  ;;  %v1398_v61 = vld [vmem:[#allocation3 + $0x10] sm:$0xff]  ;;  %v765_v62 = vsel %vm289_vm12, %v761_v48, 0.0  ;;  %v766_v34 = vsel %vm290_vm13, %v762_v51, 0.0  ;;  %1205 = vrot.lane.b32.xlu0 %v2601_v8, %s2000_s18  ;;  %v1396_v42 = vld [vmem:[#allocation3] sm:$0xff] }
 0x1c8   : > { %v680_v55 = vsel %vm263_vm10, %v676_v41, 0.0  ;;  %v681_v57 = vsel %vm264_vm11, %v677_v54, 0.0  ;;  %1269 = vrot.lane.b32.xlu1 %v2195_v15, %s1999_s26  ;;  %767 = vst [vmem:[#allocation3 + $0xa0] sm:$0xf] %v765_v62  ;;  %768 = vst [vmem:[#allocation3 + $0xa8] sm:$0xf] %v766_v34  ;;  %v1660_v14 = vpack.c.bf16 %v1398_v61, %v1396_v42  ;;  %v1662_v6 = vpack.c.bf16 %v1403_v2, %v1401_v24 }
 0x1c9   : > { %682 = vst [vmem:[#allocation3 + $0x80] sm:$0xf] %v680_v55  ;;  %683 = vst [vmem:[#allocation3 + $0x88] sm:$0xf] %v681_v57  ;;  %v803_v4 = vpop.permute.xlu0 %802  ;;  %v1672_v41 = vpack.c.bf16 %v1410_v19, %v1408_v38  ;;  %v1350_v61 = vld [vmem:[#allocation2 + $0x8] sm:$0xf] }
 0x1ca   : > { %v711_v1 = vpop.permute.xlu1 %710  ;;  %v807_v56 = vsel %vm806_vm6, %v2556_v11, %v803_v4  ;;  %v808_v58 = vsel %vm806_vm6, %v803_v4, %v2433_v33  ;;  %1661 = vmatpush1.bf16.msra.mxu0 %v1660_v14  ;;  %v1400_v11 = vld [vmem:[#allocation3 + $0x20] sm:$0xff]  ;;  %v1405_v33 = vld [vmem:[#allocation3 + $0x48] sm:$0xff]  ;;  %vm870_vm6 = vcmask 621568   ;;  %vm896_vm2 = vcmask 613376   ;;  %s1541_s26 = scalar_lea.sflag [#allocation6], %s2174_s29 }
 0x1cb   : > { %v715_v10 = vsel %vm714_vm1, %v2386_v5, %v711_v1  ;;  %v716_v15 = vsel %vm714_vm1, %v711_v1, %v2321_v44  ;;  %v1407_v27 = vld [vmem:[#allocation3 + $0x58] sm:$0xff]  ;;  %v811_v5 = vsel %vm255_vm14, %v807_v56, 0.0  ;;  %v812_v44 = vsel %vm256_vm9, %v808_v58, 0.0  ;;  %1663 = vmatprep.subr.bf16.mxu0 %v1662_v6  ;;  %1251 = vrot.lane.b32.xlu0 %v2601_v8, %s2001_s9  ;;  %v1406_v59 = vld [vmem:[#allocation3 + $0x50] sm:$0xff] }
 0x1cc   : > { %v719_v0 = vsel %vm273_vm4, %v715_v10, 0.0  ;;  %v720_v7 = vsel %vm274_vm5, %v716_v15, 0.0  ;;  %1207 = vrot.lane.b32.xlu1 %v1199_v17, %s2000_s18  ;;  %813 = vst [vmem:[#allocation3 + $0xb0] sm:$0xf] %v811_v5  ;;  %814 = vst [vmem:[#allocation3 + $0xb8] sm:$0xf] %v812_v44  ;;  %v1664_v28 = vpack.c.bf16 %v1402_v45, %v1400_v11  ;;  %v1666_v50 = vpack.c.bf16 %v1407_v27, %v1405_v33 }
 0x1cd   : > { %721 = vst [vmem:[#allocation3 + $0x90] sm:$0xf] %v719_v0  ;;  %722 = vst [vmem:[#allocation3 + $0x98] sm:$0xf] %v720_v7  ;;  %v867_v35 = vpop.permute.xlu0 %866  ;;  %v1668_v37 = vpack.c.bf16 %v1406_v59, %v1404_v13  ;;  %v1291_v27 = vld [vmem:[#allocation2 + $0x8] sm:$0xf] }
 0x1ce   : > { %v691_v29 = vpop.permute.xlu1 %690  ;;  %1665 = vmatpush1.bf16.msra.mxu0 %v1664_v28  ;;  %vm962_vm1 = vcmask 515072  }
 0x1cf   : > { %v697_v26 = vsel %vm696_vm3, %v691_v29, %v2380_v3  ;;  %1667 = vmatprep.subr.bf16.mxu0 %v1666_v50  ;;  %1203 = vrot.lane.b32.xlu0 %v2590_v63, %s2000_s18  ;;  %vm916_vm3 = vcmask 605184   ;;  %v1417_v6 = vld [vmem:[#allocation3 + $0xa8] sm:$0xff]  ;;  %v1416_v0 = vld [vmem:[#allocation3 + $0xa0] sm:$0xff]  ;;  %v1330_v50 = vld [vmem:[#allocation2 + $0x8] sm:$0xf]  ;;  %s1883_s18 = scalar_lea.vmem %s2776_s7, 128 }
 0x1d0   : > { %701 = vst [vmem:[#allocation3 + $0x80] sm:$0xf0] %v697_v26  ;;  %1253 = vrot.lane.b32.xlu1 %v1245_v9, %s2001_s9  ;;  %v1413_v20 = vld [vmem:[#allocation3 + $0x88] sm:$0xff]  ;;  %p1884_p6 = scmp.ne.s32.totalorder %s2776_s7, %s1883_s18 }
 0x1d1   : > { %v913_v40 = vpop.permute.xlu0 %912 }
 0x1d2   : > { %v869_v39 = vpop.permute.xlu1 %868  ;;  %1669 = vmatpush1.bf16.msra.mxu0 %v1668_v37  ;;  %v1823_v37 = vld [vmem:[#allocation2 + $0x8] ss:$0 sps:$4 sm:$0xff]   ;;  %p1885_p9 = pnand %p1884_p6, %p2121_p8 }
 0x1d3   : > { %v872_v53 = vsel %vm870_vm6, %v867_v35, %v869_v39  ;;  %1671 = vmatprep.subr.bf16.mxu0 %v1670_v52  ;;  %1356 = vrot.lane.b32.xlu0 %v2601_v8, %s2002_s10  ;;  %v1419_v34 = vld [vmem:[#allocation3 + $0xb8] sm:$0xff]  ;;  %v1418_v56 = vld [vmem:[#allocation3 + $0xb0] sm:$0xff]  ;;  %v1314_v39 = vcombine.low %v2590_v63, %v2590_v63 }
 0x1d4   : > { %v876_v3 = vsel %vm274_vm5, %v872_v53, 0.0  ;;  %1249 = vrot.lane.b32.xlu1 %v2590_v63, %s2001_s9  ;;  %v1415_v43 = vld [vmem:[#allocation3 + $0x98] sm:$0xff]  ;;  %v1414_v62 = vld [vmem:[#allocation3 + $0x90] sm:$0xff]  ;;  %v1678_v15 = vpack.c.bf16 %v1419_v34, %v1417_v6  ;;  %v1680_v5 = vpack.c.bf16 %v1418_v56, %v1416_v0  ;;  %p1886_p12 = pneg %p1885_p9  ;;  %s1887_s9 = sshll.u32 %s2008_s16, 4  ;;  %s1888_s9 = int_to_ptr.vmem [resolvable:$false] %s1887_s9 }
 0x1d5   : > { %v880_v47 = vrot.slane %v876_v3, 4  ;;  %v1674_v54 = vpack.c.bf16 %v1415_v43, %v1413_v20  ;;  %v865_v51 = vpop.permute.xlu0 %864  ;;  %p1890_p13 = scmp.lt.s32.totalorder %s2776_s7, %s1888_s9 }
 0x1d6   : > { %v915_v48 = vpop.permute.xlu1 %914  ;;  %v871_v55 = vsel %vm870_vm6, %v865_v51, %v867_v35  ;;  %1673 = vmatpush1.bf16.msra.mxu0 %v1672_v41  ;;  %vm942_vm6 = vcmask 523264  }
 0x1d7   : > { %884 = vst [vmem:[#allocation3 + $0xc8] sm:$0xf0] %v880_v47  ;;  %v918_v2 = vsel %vm916_vm3, %v913_v40, %v915_v48  ;;  %v1412_v57 = vld [vmem:[#allocation3 + $0x80] sm:$0xff]  ;;  %v875_v14 = vsel %vm273_vm4, %v871_v55, 0.0  ;;  %1675 = vmatprep.subr.bf16.mxu0 %v1674_v54  ;;  %1354 = vrot.lane.b32.xlu0 %v2590_v63, %s2002_s10  ;;  %v1376_v55 = vld [vmem:[#allocation2 + $0x8] sm:$0xf] }
 0x1d8   : > { %v922_v42 = vsel %vm290_vm13, %v918_v2, 0.0  ;;  %1358 = vrot.lane.b32.xlu1 %v1350_v61, %s2002_s10  ;;  %v1676_v24 = vpack.c.bf16 %v1414_v62, %v1412_v57  ;;  %v879_v4 = vrot.slane %v875_v14, 4  ;;  %v2676_v61 = vld [vmem:[#allocation4] sm:$0xff]  ;;  %v2007_v14 = vmov 0   ;;  %s1889_s10 = scalar_lea.vmem %s1888_s9, 256 }
 0x1d9   : > { %v926_v1 = vrot.slane %v922_v42, 4  ;;  %v893_v10 = vpop.permute.xlu0 %892  ;;  %v1453_v34 = vcombine.high %v2676_v61, %v2676_v61  ;;  %1815 = vset.pattern.permute.xlu0 %v2007_v14  ;;  %1814 = vset.pattern.permute.xlu1 %v2007_v14  ;;  %p1891_p0 = scmp.lt.s32.totalorder %s1889_s10, %s1883_s18 }
 0x1da   : > { %v911_v45 = vpop.permute.xlu1 %910  ;;  %883 = vst [vmem:[#allocation3 + $0xc0] sm:$0xf0] %v879_v4  ;;  %1677 = vmatpush1.bf16.msra.mxu0 %v1676_v24  ;;  %v1446_v24 = vld [vmem:[%s2819_s1] sm:$0xf] }
 0x1db   : > { %930 = vst [vmem:[#allocation3 + $0xd8] sm:$0xf0] %v926_v1  ;;  %v917_v58 = vsel %vm916_vm3, %v911_v45, %v913_v40  ;;  %1679 = vmatprep.subr.bf16.mxu0 %v1678_v15  ;;  %1299 = vrot.lane.b32.xlu0 %v1291_v27, %s2003_s21  ;;  %vm1454_vm3 = vcmask 556032   ;;  %p1892_p5 = por %p1891_p0, %p1890_p13 }
 0x1dc   : > { %v921_v17 = vsel %vm289_vm12, %v917_v58, 0.0  ;;  %1297 = vrot.lane.b32.xlu1 %v2601_v8, %s2003_s21  ;;  %1650 = vmatprep.mubr.msk.f32.mxu0 %vm1454_vm3, %v1453_v34  ;;  %vm1093_vm3 = vcmask 392192  }
 0x1dd   : > { %v925_v7 = vrot.slane %v921_v17, 4  ;;  %v849_v11 = vpop.permute.xlu0 %848  ;;  %p1893_p10 = pnand %p1892_p5, %p1886_p12 }
 0x1de   : > { %v895_v44 = vpop.permute.xlu1 %894  ;;  %1681 = vmatpush1.bf16.msra.mxu0 %v1680_v5 }
 0x1df   : > { %929 = vst [vmem:[#allocation3 + $0xd0] sm:$0xf0] %v925_v7  ;;  %v898_v33 = vsel %vm896_vm2, %v893_v10, %v895_v44  ;;  %1338 = vrot.lane.b32.xlu0 %v1330_v50, %s2004_s24 }
 0x1e0   : > { %v902_v28 = vsel %vm282_vm0, %v898_v33, 0.0  ;;  %1336 = vrot.lane.b32.xlu1 %v2601_v8, %s2004_s24 }
 0x1e1   : > { %904 = vst [vmem:[#allocation3 + $0xd8] sm:$0xf] %v902_v28  ;;  %v891_v35 = vpop.permute.xlu0 %890 }
 0x1e2   : > { %v851_v29 = vpop.permute.xlu1 %850  ;;  %v897_v26 = vsel %vm896_vm2, %v891_v35, %v893_v10  ;;  %vm988_vm2 = vcmask 506880  }
 0x1e3   : > { %v854_v59 = vsel %vm852_vm8, %v849_v11, %v851_v29  ;;  %v901_v9 = vsel %vm281_vm15, %v897_v26, 0.0  ;;  %1318 = vrot.lane.b32.xlu0 %v2590_v63, %s2005_s25 }
 0x1e4   : > { %858 = vst [vmem:[#allocation3 + $0xc8] sm:$0xf] %v854_v59  ;;  %1295 = vrot.lane.b32.xlu1 %v2590_v63, %s2003_s21  ;;  %903 = vst [vmem:[#allocation3 + $0xd0] sm:$0xf] %v901_v9 }
 0x1e5   : > { %v959_v13 = vpop.permute.xlu0 %958 }
 0x1e6   : > { %v847_v60 = vpop.permute.xlu1 %846 }
 0x1e7   : > { %v853_v21 = vsel %vm852_vm8, %v847_v60, %v849_v11  ;;  %1334 = vrot.lane.b32.xlu0 %v2590_v63, %s2004_s24  ;;  %vm2856_vm8 = vcmp.ge.s32.totalorder %v2191_v12, 0 }
 0x1e8   : > { %857 = vst [vmem:[#allocation3 + $0xc0] sm:$0xf] %v853_v21  ;;  %1320 = vrot.lane.b32.xlu1 %v1823_v37, %s2005_s25  ;;  %v1423_v38 = vld [vmem:[#allocation3 + $0xd8] sm:$0xff] }
 0x1e9   : > { %v957_v52 = vpop.permute.xlu0 %956 }
 0x1ea   : > { %v961_v40 = vpop.permute.xlu1 %960  ;;  %v963_v53 = vsel %vm962_vm1, %v957_v52, %v959_v13 }
 0x1eb   : > { %v964_v19 = vsel %vm962_vm1, %v959_v13, %v961_v40  ;;  %v1421_v3 = vld [vmem:[#allocation3 + $0xc8] sm:$0xff]  ;;  %v967_v43 = vsel %vm255_vm14, %v963_v53, 0.0  ;;  %1382 = vrot.lane.b32.xlu0 %v2601_v8, %s2006_s28  ;;  %v1422_v62 = vld [vmem:[#allocation3 + $0xd0] sm:$0xff]  ;;  %vm1009_vm1 = vcmask 498688  }
 0x1ec   : > { %v968_v20 = vsel %vm256_vm9, %v964_v19, 0.0  ;;  %1316 = vrot.lane.b32.xlu1 %v1314_v39, %s2005_s25  ;;  %v1682_v47 = vpack.c.bf16 %v1423_v38, %v1421_v3  ;;  %v971_v54 = vrot.slane %v967_v43, 4 }
 0x1ed   : > { %v972_v41 = vrot.slane %v968_v20, 4  ;;  %v941_v51 = vpop.permute.xlu0 %940 }
 0x1ee   : > { %v939_v48 = vpop.permute.xlu1 %938  ;;  %1683 = vmatprep.subr.bf16.mxu0 %v1682_v47  ;;  %975 = vst [vmem:[#allocation3 + $0xe0] sm:$0xf0] %v971_v54 }
 0x1ef   : > { %976 = vst [vmem:[#allocation3 + $0xe8] sm:$0xf0] %v972_v41  ;;  %v944_v2 = vsel %vm942_vm6, %v939_v48, %v941_v51  ;;  %v1420_v57 = vld [vmem:[#allocation3 + $0xc0] sm:$0xff]  ;;  %1380 = vrot.lane.b32.xlu0 %v2590_v63, %s2006_s28 }
 0x1f0   : > { %v948_v42 = vsel %vm248_vm7, %v944_v2, 0.0  ;;  %1384 = vrot.lane.b32.xlu1 %v1376_v55, %s2006_s28  ;;  %v1684_v8 = vpack.c.bf16 %v1422_v62, %v1420_v57 }
 0x1f1   : > { %950 = vst [vmem:[#allocation3 + $0xe8] sm:$0xf] %v948_v42  ;;  %v987_v4 = vpop.permute.xlu0 %986 }
 0x1f2   : > { %v985_v1 = vpop.permute.xlu1 %984  ;;  %1685 = vmatpush1.bf16.msra.mxu0 %v1684_v8 }
 0x1f3   : > { %v990_v6 = vsel %vm988_vm2, %v985_v1, %v987_v4 }
 0x1f4   : > { %v994_v45 = vsel %vm264_vm11, %v990_v6, 0.0  ;;  %1449 = vperm.xlu1 %1814, %v1446_v24  }
 0x1f5   : > { %996 = vst [vmem:[#allocation3 + $0xf8] sm:$0xf] %v994_v45  ;;  %v983_v15 = vpop.permute.xlu0 %982 }
 0x1f6   : > { %v937_v10 = vpop.permute.xlu1 %936  ;;  %v989_v56 = vsel %vm988_vm2, %v983_v15, %v985_v1  ;;  %vm2857_vm2 = vmmov %vm2856_vm8 }
 0x1f7   : > { %v943_v63 = vsel %vm942_vm6, %v937_v10, %v939_v48  ;;  %v993_v17 = vsel %vm263_vm10, %v989_v56, 0.0  ;;  %vm1047_vm6 = vcmask 482304  }
 0x1f8   : > { %v947_v58 = vsel %vm2856_vm8, %v943_v63, 0.0  ;;  %995 = vst [vmem:[#allocation3 + $0xf0] sm:$0xf] %v993_v17  ;;  %v1425_v29 = vld [vmem:[#allocation3 + $0xe8] sm:$0xff]  ;;  %vm1027_vm8 = vcmask 490496  }
 0x1f9   : > { %949 = vst [vmem:[#allocation3 + $0xe0] sm:$0xf] %v947_v58  ;;  %v1008_v0 = vpop.permute.xlu0 %1007 }
 0x1fa   : > { %v1006_v27 = vpop.permute.xlu1 %1005 }
 0x1fb   : > { %v1011_v7 = vsel %vm1009_vm1, %v1006_v27, %v1008_v0 }
 0x1fc   : > { %1015 = vst [vmem:[#allocation3 + $0xf8] sm:$0xf0] %v1011_v7 }
 0x1fd   : > { %v1044_v44 = vpop.permute.xlu0 %1043 }
 0x1fe   : > { %v1004_v5 = vpop.permute.xlu1 %1003 }
 0x1ff   : > { %v1010_v11 = vsel %vm1009_vm1, %v1004_v5, %v1006_v27  ;;  %vm1073_vm1 = vcmask 474112  }
 0x200   : > { %1014 = vst [vmem:[#allocation3 + $0xf0] sm:$0xf0] %v1010_v11  ;;  %v1424_v39 = vld [vmem:[#allocation3 + $0xe0] sm:$0xff] }
 0x201   : > { %v1090_v28 = vpop.permute.xlu0 %1089 }
 0x202   : > { %v1046_v33 = vpop.permute.xlu1 %1045 }
 0x203   : > { %v1049_v50 = vsel %vm1047_vm6, %v1044_v44, %v1046_v33  ;;  %v1427_v35 = vld [vmem:[#allocation3 + $0xf8] sm:$0xff] }
 0x204   : > { %v1053_v59 = vsel %vm282_vm0, %v1049_v50, 0.0  ;;  %v1686_v26 = vpack.c.bf16 %v1427_v35, %v1425_v29 }
 0x205   : > { %v1057_v9 = vrot.slane %v1053_v59, 4  ;;  %v1042_v13 = vpop.permute.xlu0 %1041 }
 0x206   : > { %v1092_v60 = vpop.permute.xlu1 %1091  ;;  %1687 = vmatprep.subr.bf16.mxu0 %v1686_v26  ;;  %v1048_v21 = vsel %vm1047_vm6, %v1042_v13, %v1044_v44  ;;  %vm1139_vm6 = vcmask 375808  }
 0x207   : > { %1061 = vst [vmem:[#allocation3 + $0x108] sm:$0xf0] %v1057_v9  ;;  %v1095_v37 = vsel %vm1093_vm3, %v1090_v28, %v1092_v60  ;;  %v1426_v40 = vld [vmem:[#allocation3 + $0xf0] sm:$0xff]  ;;  %v1052_v19 = vsel %vm281_vm15, %v1048_v21, 0.0 }
 0x208   : > { %v1099_v52 = vsel %vm248_vm7, %v1095_v37, 0.0  ;;  %v1688_v53 = vpack.c.bf16 %v1426_v40, %v1424_v39  ;;  %v1056_v38 = vrot.slane %v1052_v19, 4 }
 0x209   : > { %v1103_v3 = vrot.slane %v1099_v52, 4  ;;  %v1024_v43 = vpop.permute.xlu0 %1023 }
 0x20a   : > { %v1088_v20 = vpop.permute.xlu1 %1087  ;;  %1689 = vmatpush1.bf16.msra.mxu0 %v1688_v53  ;;  %1060 = vst [vmem:[#allocation3 + $0x100] sm:$0xf0] %v1056_v38 }
 0x20b   : > { %1107 = vst [vmem:[#allocation3 + $0x118] sm:$0xf0] %v1103_v3  ;;  %v1094_v47 = vsel %vm1093_vm3, %v1088_v20, %v1090_v28  ;;  %vm1183_vm3 = vcmask 359424  }
 0x20c   : > { %v1098_v41 = vsel %vm2857_vm2, %v1094_v47, 0.0  ;;  %vm1119_vm2 = vcmask 384000  }
 0x20d   : > { %v1102_v54 = vrot.slane %v1098_v41, 4  ;;  %v1070_v51 = vpop.permute.xlu0 %1069 }
 0x20e   : > { %v1026_v48 = vpop.permute.xlu1 %1025 }
 0x20f   : > { %1106 = vst [vmem:[#allocation3 + $0x110] sm:$0xf0] %v1102_v54  ;;  %v1029_v2 = vsel %vm1027_vm8, %v1024_v43, %v1026_v48 }
 0x210   : > { %v1033_v55 = vsel %vm274_vm5, %v1029_v2, 0.0 }
 0x211   : > { %1035 = vst [vmem:[#allocation3 + $0x108] sm:$0xf] %v1033_v55  ;;  %v1022_v62 = vpop.permute.xlu0 %1021 }
 0x212   : > { %v1072_v57 = vpop.permute.xlu1 %1071  ;;  %v1028_v42 = vsel %vm1027_vm8, %v1022_v62, %v1024_v43  ;;  %vm1165_vm8 = vcmask 367616  }
 0x213   : > { %v1075_v34 = vsel %vm1073_vm1, %v1070_v51, %v1072_v57  ;;  %v1032_v14 = vsel %vm273_vm4, %v1028_v42, 0.0 }
 0x214   : > { %v1079_v8 = vsel %vm290_vm13, %v1075_v34, 0.0  ;;  %1034 = vst [vmem:[#allocation3 + $0x100] sm:$0xf] %v1032_v14 }
 0x215   : > { %1081 = vst [vmem:[#allocation3 + $0x118] sm:$0xf] %v1079_v8  ;;  %v1136_v1 = vpop.permute.xlu0 %1135 }
 0x216   : > { %v1068_v24 = vpop.permute.xlu1 %1067 }
 0x217   : > { %v1074_v4 = vsel %vm1073_vm1, %v1068_v24, %v1070_v51  ;;  %vm1229_vm1 = vcmask 343040  }
 0x218   : > { %v1078_v6 = vsel %vm289_vm12, %v1074_v4, 0.0  ;;  %v1429_v56 = vld [vmem:[#allocation3 + $0x108] sm:$0xff] }
 0x219   : > { %1080 = vst [vmem:[#allocation3 + $0x110] sm:$0xf] %v1078_v6  ;;  %v1180_v10 = vpop.permute.xlu0 %1179 }
 0x21a   : > { %v1138_v45 = vpop.permute.xlu1 %1137 }
 0x21b   : > { %v1141_v15 = vsel %vm1139_vm6, %v1136_v1, %v1138_v45  ;;  %v1428_v28 = vld [vmem:[#allocation3 + $0x100] sm:$0xff] }
 0x21c   : > { %v1145_v63 = vsel %vm264_vm11, %v1141_v15, 0.0  ;;  %v1431_v58 = vld [vmem:[#allocation3 + $0x118] sm:$0xff] }
 0x21d   : > { %v1149_v17 = vrot.slane %v1145_v63, 4  ;;  %v1690_v27 = vpack.c.bf16 %v1431_v58, %v1429_v56  ;;  %v1134_v7 = vpop.permute.xlu0 %1133 }
 0x21e   : > { %v1182_v0 = vpop.permute.xlu1 %1181  ;;  %v1140_v44 = vsel %vm1139_vm6, %v1134_v7, %v1136_v1  ;;  %vm1275_vm6 = vcmask 252928  }
 0x21f   : > { %1153 = vst [vmem:[#allocation3 + $0x128] sm:$0xf0] %v1149_v17  ;;  %v1185_v5 = vsel %vm1183_vm3, %v1180_v10, %v1182_v0  ;;  %1691 = vmatprep.subr.bf16.mxu0 %v1690_v27  ;;  %v1144_v33 = vsel %vm263_vm10, %v1140_v44, 0.0 }
 0x220   : > { %v1189_v11 = vsel %vm274_vm5, %v1185_v5, 0.0  ;;  %v1430_v50 = vld [vmem:[#allocation3 + $0x110] sm:$0xff]  ;;  %v1148_v35 = vrot.slane %v1144_v33, 4 }
 0x221   : > { %v1193_v29 = vrot.slane %v1189_v11, 4  ;;  %v1692_v59 = vpack.c.bf16 %v1430_v50, %v1428_v28  ;;  %v1116_v9 = vpop.permute.xlu0 %1115 }
 0x222   : > { %v1178_v26 = vpop.permute.xlu1 %1177  ;;  %1152 = vst [vmem:[#allocation3 + $0x120] sm:$0xf0] %v1148_v35 }
 0x223   : > { %1197 = vst [vmem:[#allocation3 + $0x138] sm:$0xf0] %v1193_v29  ;;  %v1184_v60 = vsel %vm1183_vm3, %v1178_v26, %v1180_v10  ;;  %1693 = vmatpush1.bf16.msra.mxu0 %v1692_v59  ;;  %vm1209_vm3 = vcmask 351232  }
 0x224   : > { %v1188_v13 = vsel %vm273_vm4, %v1184_v60, 0.0 }
 0x225   : > { %v1192_v37 = vrot.slane %v1188_v13, 4  ;;  %v1114_v39 = vpop.permute.xlu0 %1113 }
 0x226   : > { %v1118_v21 = vpop.permute.xlu1 %1117  ;;  %v1120_v52 = vsel %vm1119_vm2, %v1114_v39, %v1116_v9 }
 0x227   : > { %1196 = vst [vmem:[#allocation3 + $0x130] sm:$0xf0] %v1192_v37  ;;  %v1121_v40 = vsel %vm1119_vm2, %v1116_v9, %v1118_v21  ;;  %v1124_v53 = vsel %vm255_vm14, %v1120_v52, 0.0  ;;  %vm1360_vm2 = vcmask 220160  }
 0x228   : > { %v1125_v19 = vsel %vm256_vm9, %v1121_v40, 0.0  ;;  %1126 = vst [vmem:[#allocation3 + $0x120] sm:$0xf] %v1124_v53 }
 0x229   : > { %1127 = vst [vmem:[#allocation3 + $0x128] sm:$0xf] %v1125_v19  ;;  %v1164_v38 = vpop.permute.xlu0 %1163 }
 0x22a   : > { %v1162_v3 = vpop.permute.xlu1 %1161 }
 0x22b   : > { %v1167_v20 = vsel %vm1165_vm8, %v1162_v3, %v1164_v38 }
 0x22c   : > { %1171 = vst [vmem:[#allocation3 + $0x138] sm:$0xf] %v1167_v20 }
 0x22d   : > { %v1226_v47 = vpop.permute.xlu0 %1225 }
 0x22e   : > { %v1160_v43 = vpop.permute.xlu1 %1159 }
 0x22f   : > { %v1166_v41 = vsel %vm1165_vm8, %v1160_v43, %v1162_v3  ;;  %v1432_v1 = vld [vmem:[#allocation3 + $0x120] sm:$0xff] }
 0x230   : > { %1170 = vst [vmem:[#allocation3 + $0x130] sm:$0xf] %v1166_v41  ;;  %v1433_v2 = vld [vmem:[#allocation3 + $0x128] sm:$0xff] }
 0x231   : > { %v1272_v48 = vpop.permute.xlu0 %1271 }
 0x232   : > { %v1228_v54 = vpop.permute.xlu1 %1227 }
 0x233   : > { %v1231_v51 = vsel %vm1229_vm1, %v1226_v47, %v1228_v54  ;;  %v1435_v55 = vld [vmem:[#allocation3 + $0x138] sm:$0xff] }
 0x234   : > { %v1235_v57 = vsel %vm290_vm13, %v1231_v51, 0.0  ;;  %v1694_v62 = vpack.c.bf16 %v1435_v55, %v1433_v2 }
 0x235   : > { %v1239_v34 = vrot.slane %v1235_v57, 4  ;;  %v1224_v8 = vpop.permute.xlu0 %1223 }
 0x236   : > { %v1274_v42 = vpop.permute.xlu1 %1273  ;;  %1695 = vmatprep.subr.bf16.mxu0 %v1694_v62  ;;  %v1230_v24 = vsel %vm1229_vm1, %v1224_v8, %v1226_v47 }
 0x237   : > { %1243 = vst [vmem:[#allocation3 + $0x148] sm:$0xf0] %v1239_v34  ;;  %v1277_v14 = vsel %vm1275_vm6, %v1272_v48, %v1274_v42  ;;  %v1434_v4 = vld [vmem:[#allocation3 + $0x130] sm:$0xff]  ;;  %v1234_v45 = vsel %vm289_vm12, %v1230_v24, 0.0 }
 0x238   : > { %v1281_v6 = vsel %vm256_vm9, %v1277_v14, 0.0  ;;  %v1696_v10 = vpack.c.bf16 %v1434_v4, %v1432_v1  ;;  %v1238_v63 = vrot.slane %v1234_v45, 4  ;;  %vm1255_vm9 = vcmask 261120  }
 0x239   : > { %v1285_v15 = vrot.slane %v1281_v6, 4  ;;  %v1206_v58 = vpop.permute.xlu0 %1205 }
 0x23a   : > { %v1270_v56 = vpop.permute.xlu1 %1269  ;;  %1697 = vmatpush1.bf16.msra.mxu0 %v1696_v10  ;;  %1242 = vst [vmem:[#allocation3 + $0x140] sm:$0xf0] %v1238_v63 }
 0x23b   : > { %1289 = vst [vmem:[#allocation3 + $0x158] sm:$0xf0] %v1285_v15  ;;  %v1276_v17 = vsel %vm1275_vm6, %v1270_v56, %v1272_v48 }
 0x23c   : > { %v1280_v27 = vsel %vm255_vm14, %v1276_v17, 0.0  ;;  %vm2858_vm14 = vcmp.ge.s32.totalorder %v2191_v12, 0 }
 0x23d   : > { %v1284_v0 = vrot.slane %v1280_v27, 4  ;;  %v1252_v5 = vpop.permute.xlu0 %1251 }
 0x23e   : > { %v1208_v18 = vpop.permute.xlu1 %1207 }
 0x23f   : > { %1288 = vst [vmem:[#allocation3 + $0x150] sm:$0xf0] %v1284_v0  ;;  %v1211_v7 = vsel %vm1209_vm3, %v1206_v58, %v1208_v18 }
 0x240   : > { %v1215_v44 = vsel %vm282_vm0, %v1211_v7, 0.0 }
 0x241   : > { %1217 = vst [vmem:[#allocation3 + $0x148] sm:$0xf] %v1215_v44  ;;  %v1204_v28 = vpop.permute.xlu0 %1203 }
 0x242   : > { %v1254_v11 = vpop.permute.xlu1 %1253  ;;  %v1210_v29 = vsel %vm1209_vm3, %v1204_v28, %v1206_v58 }
 0x243   : > { %v1257_v33 = vsel %vm1255_vm9, %v1252_v5, %v1254_v11  ;;  %v1214_v30 = vsel %vm281_vm15, %v1210_v29, 0.0 }
 0x244   : > { %v1261_v50 = vsel %vm248_vm7, %v1257_v33, 0.0  ;;  %1216 = vst [vmem:[#allocation3 + $0x140] sm:$0xf] %v1214_v30  ;;  %vm1301_vm7 = vcmask 244736  }
 0x245   : > { %1263 = vst [vmem:[#allocation3 + $0x158] sm:$0xf] %v1261_v50  ;;  %v1357_v26 = vpop.permute.xlu0 %1356 }
 0x246   : > { %v1250_v35 = vpop.permute.xlu1 %1249 }
 0x247   : > { %v1256_v59 = vsel %vm1255_vm9, %v1250_v35, %v1252_v5 }
 0x248   : > { %v1260_v9 = vsel %vm2858_vm14, %v1256_v59, 0.0  ;;  %v1437_v39 = vld [vmem:[#allocation3 + $0x148] sm:$0xff] }
 0x249   : > { %1262 = vst [vmem:[#allocation3 + $0x150] sm:$0xf] %v1260_v9  ;;  %v1355_v37 = vpop.permute.xlu0 %1354 }
 0x24a   : > { %v1359_v60 = vpop.permute.xlu1 %1358  ;;  %v1361_v21 = vsel %vm1360_vm2, %v1355_v37, %v1357_v26 }
 0x24b   : > { %v1362_v13 = vsel %vm1360_vm2, %v1357_v26, %v1359_v60  ;;  %v1365_v19 = vsel %vm281_vm15, %v1361_v21, 0.0  ;;  %v1436_v43 = vld [vmem:[#allocation3 + $0x140] sm:$0xff]  ;;  %vm1386_vm15 = vcmask 211968  }
 0x24c   : > { %v1366_v16 = vsel %vm282_vm0, %v1362_v13, 0.0  ;;  %v1439_v40 = vld [vmem:[#allocation3 + $0x158] sm:$0xff]  ;;  %v1369_v3 = vrot.slane %v1365_v19, 4  ;;  %vm1340_vm0 = vcmask 228352  }
 0x24d   : > { %v1370_v52 = vrot.slane %v1366_v16, 4  ;;  %v1698_v53 = vpack.c.bf16 %v1439_v40, %v1437_v39  ;;  %v1300_v38 = vpop.permute.xlu0 %1299 }
 0x24e   : > { %v1298_v12 = vpop.permute.xlu1 %1297  ;;  %1373 = vst [vmem:[#allocation3 + $0x170] sm:$0xf0] %v1369_v3 }
 0x24f   : > { %1374 = vst [vmem:[#allocation3 + $0x178] sm:$0xf0] %v1370_v52  ;;  %1699 = vmatprep.subr.bf16.mxu0 %v1698_v53  ;;  %v1303_v20 = vsel %vm1301_vm7, %v1298_v12, %v1300_v38 }
 0x250   : > { %v1438_v32 = vld [vmem:[#allocation3 + $0x150] sm:$0xff]  ;;  %v1307_v47 = vsel %vm264_vm11, %v1303_v20, 0.0  ;;  %vm1322_vm11 = vcmask 236544  }
 0x251   : > { %v1700_v41 = vpack.c.bf16 %v1438_v32, %v1436_v43  ;;  %1309 = vst [vmem:[#allocation3 + $0x168] sm:$0xf] %v1307_v47  ;;  %v1339_v54 = vpop.permute.xlu0 %1338 }
 0x252   : > { %v1337_v31 = vpop.permute.xlu1 %1336 }
 0x253   : > { %1701 = vmatpush1.bf16.msra.mxu0 %v1700_v41  ;;  %v1342_v48 = vsel %vm1340_vm0, %v1337_v31, %v1339_v54 }
 0x254   : > { %v1346_v51 = vsel %vm274_vm5, %v1342_v48, 0.0 }
 0x255   : > { %1348 = vst [vmem:[#allocation3 + $0x178] sm:$0xf] %v1346_v51  ;;  %v1319_v57 = vpop.permute.xlu0 %1318 }
 0x256   : > { %v1296_v2 = vpop.permute.xlu1 %1295 }
 0x257   : > { %v1302_v55 = vsel %vm1301_vm7, %v1296_v2, %v1298_v12 }
 0x258   : > { %v1306_v23 = vsel %vm263_vm10, %v1302_v55, 0.0  ;;  %vm1457_vm10 = vcmask 1043456  }
 0x259   : > { %1308 = vst [vmem:[#allocation3 + $0x160] sm:$0xf] %v1306_v23  ;;  %v1335_v42 = vpop.permute.xlu0 %1334 }
 0x25a   : > { %v1321_v62 = vpop.permute.xlu1 %1320  ;;  %v1341_v8 = vsel %vm1340_vm0, %v1335_v42, %v1337_v31 }
 0x25b   : > { %v1324_v34 = vsel %vm1322_vm11, %v1319_v57, %v1321_v62  ;;  %v1345_v25 = vsel %vm273_vm4, %v1341_v8, 0.0 }
 0x25c   : > { %1328 = vst [vmem:[#allocation3 + $0x168] sm:$0xf0] %v1324_v34  ;;  %1347 = vst [vmem:[#allocation3 + $0x170] sm:$0xf] %v1345_v25  ;;  %v1443_v10 = vld [vmem:[#allocation3 + $0x178] sm:$0xff] }
 0x25d   : > { %v1383_v1 = vpop.permute.xlu0 %1382 }
 0x25e   : > { %v1317_v14 = vpop.permute.xlu1 %1316 }
 0x25f   : > { %v1323_v24 = vsel %vm1322_vm11, %v1317_v14, %v1319_v57 }
 0x260   : > { %1327 = vst [vmem:[#allocation3 + $0x160] sm:$0xf0] %v1323_v24 }
 0x261   : > { %v1381_v6 = vpop.permute.xlu0 %1380 }
 0x262   : > { %v1385_v4 = vpop.permute.xlu1 %1384  ;;  %v1387_v63 = vsel %vm1386_vm15, %v1381_v6, %v1383_v1 }
 0x263   : > { %v1388_v22 = vsel %vm1386_vm15, %v1383_v1, %v1385_v4  ;;  %v1441_v45 = vld [vmem:[#allocation3 + $0x168] sm:$0xff]  ;;  %v1391_v49 = vsel %vm289_vm12, %v1387_v63, 0.0  ;;  %v1442_v17 = vld [vmem:[#allocation3 + $0x170] sm:$0xff] }
 0x264   : > { %v1392_v15 = vsel %vm290_vm13, %v1388_v22, 0.0  ;;  %v1702_v56 = vpack.c.bf16 %v1443_v10, %v1441_v45  ;;  %1393 = vst [vmem:[#allocation3 + $0x180] sm:$0xf] %v1391_v49 }
 0x265   : > { %1394 = vst [vmem:[#allocation3 + $0x188] sm:$0xf] %v1392_v15 }
 0x266   : > { %1703 = vmatprep.subr.bf16.mxu0 %v1702_v56 }
 0x267   : > { %v1440_v58 = vld [vmem:[#allocation3 + $0x160] sm:$0xff] }
 0x268   : > { %v1704_v27 = vpack.c.bf16 %v1442_v17, %v1440_v58 }
 0x26a   : > { %1705 = vmatpush1.bf16.msra.mxu0 %v1704_v27 }
 0x26b   : > { %v1444_v46 = vld [vmem:[#allocation3 + $0x180] sm:$0xf] }
 0x26c   : > { %v1445_v0 = vld [vmem:[#allocation3 + $0x188] sm:$0xf] }
 0x26d   : > { %1648 = vmatprep.subr.msk.mxu0 %vm1457_vm10, %v1445_v0 }
 0x26e   : > { %1649 = vmatpush1.msk.msra.mxu0 %vm1457_vm10, %v1444_v46 }
 0x26f   : > { %1529 = vmatmul.mubr.f32.vlgmr.msra.gmra.mrb[0].mxu0 %v2676_v61 }
 0x273   : > { %v1450_v18 = vpop.permute.xlu1 %1449 }
 0x342   : > { %v1530_v36 = vpop.f32.mrb[0].mxu0 }
 0x343   : > { %v1531_v7 = vadd.f32 %v1530_v36, %v1450_v18  ;;  %v1532_v5 = vpop.f32.mrb[1].mxu0 }
 0x344   : > { %v1533_v44 = vadd.f32 %v1532_v5, %v1450_v18 }
 0x346   : > { %v1537_v11 = vcombine.low %v1531_v7, %v1533_v44 }
 0x348   : > { %1539 = vst [vmem:[%s199_s5] sm:$0xff] %v1537_v11 }
 0x349   : > { %1896 = shalt.err (!%p1893_p10)
}
 0x34a   : > { %s1897_s29 = scalar_lea.hbm %s2774_s6, 128  ;;  %s1901_s25 = scalar_lea.hbm %s2821_s3, 256 }
 0x34b   : > { %p1898_p1 = scmp.ne.s32.totalorder %s2774_s6, %s1897_s29  ;;  %p1902_p3 = scmp.lt.u32.totalorder %s2774_s6, %s2821_s3 }
 0x34c   : > { %p1903_p4 = scmp.lt.u32.totalorder %s1901_s25, %s1897_s29  ;;  %p1905_p6 = scmp.lt.u32.totalorder %s1897_s29, %s2774_s6 }
 0x34d   : > { %p1899_p2 = pnand %p1898_p1, %p2121_p8 }
 0x34e   : > { %p1904_p11 = por %p1903_p4, %p1902_p3 }
 0x34f   : > { %p1900_p7 = pneg %p1899_p2 }
 0x350   : > { %p1906_p9 = por %p1905_p6, %p1904_p11 }
 0x352   : > { %p1907_p12 = pnand %p1906_p9, %p1900_p7 }
 0x354   : > { %1910 = shalt.err (!%p1907_p12)
}
 0x355   : > { %1712 = dma.vmem_to_hbm [thread:$0]  (%p2121_p8), %s2776_s7, 128, %s2774_s6, %s1541_s26  }
 0x356 PF: > { %s1567_s22 = sand.u32 1, %s1941_s12   ;;  %p2860_p13 = scmp.ne.s32.totalorder %s2836_s19, 0 }
 0x357   : > { %p2861_p0 = scmp.ge.s32.totalorder %s1953_s15, 2  ;;  %s1568_s20 = scalar_lea.sflag [#allocation6], %s1567_s22 }
 0x359   : > { %p1723_p5 = pnand %p2861_p0, %p2860_p13 }
 0x35b   : > { %1936 = dma.done.wait (!%p1723_p5), %s1568_s20, 128  }
 0x35c   : > { %1938 = vsyncadd (!%p1723_p5), %s1568_s20, 4294967168  ;;  %p17_p10 = scmp.ge.s32.totalorder %s2077_s23, 4   ;;  %s2862_s12 = smov %s1945_s13 }
 0x35d   : > { %s2863_s13 = smov %s1949_s14  ;;  %s2864_s14 = smov %s2113_s11 }
 0x35e   : > { %s2865_s15 = smov %s2077_s23  ;;  %19 = sbr.rel (!%p17_p10) target bundleno = 6 (0x6), region = 82 }
 0x365   :  { %1573 = vsyncpa [#allocation5], 1 }
 0x366   :  { %1575 = vsyncpa [#allocation5 + $0x1], 1 }
 0x367   :  { %1576 = vsyncpa [#allocation8], 1 }
 0x368   :  { %1578 = vsyncpa [#allocation8 + $0x1], 1 }
 0x369   :  { %1579 = vsyncpa [#allocation6], 1 }
 0x36a   :  { %1581 = vsyncpa [#allocation6 + $0x1], 1 }

</bundles_post_ra>
